<compile_context>
chip_gen: v5e
topology: v5e:2x2
jax: 0.10.0
libtpu: 0.0.40
codegen_flags: <defaults>
</compile_context>

<pallas_src>
import functools
import numpy as np

import jax
import jax.numpy as jnp
from jax import lax
from jax.experimental import pallas as pl
from jax.experimental.pallas import tpu as pltpu


# ----------------------------------------------------------------------------
# Fully fused forward kernel (one pallas_call for the whole model)
# ----------------------------------------------------------------------------

def _fused_forward_call(fp, x2, cfg, B, Ns):
    E = cfg['embedding_dim']
    W = cfg['window_size']
    H = cfg['spatial_temporal_heads']
    P = cfg['padding_size']
    C = cfg['cnn_embedding_dim']
    Hp = cfg['patch_attention_heads']
    Ep = ((E + P - 1) // P) * P
    T = Ep // P
    BN = B * Ns
    HE = H * E
    HpC = Hp * C
    pad_left = (Ep - E) // 2
    inv_scale_st = 1.0 / float(E)             # torch: att / embedding_dim
    inv_scale_cnn = 1.0 / float(np.sqrt(E))   # torch: att / sqrt(embedding_dim)
    NEG = np.float32(-1e30)

    # Additive block-diagonal biases restricting attention to rows of the same
    # batch element (ST attention, rows ordered (b, n)) / the same (b, n) row
    # (patch attention, rows ordered (t, b*n)).  exp(-1e30) == 0 in f32, so the
    # result is identical to per-group attention.
    idx = np.arange(BN)
    st_bias = jnp.asarray(np.where(idx[:, None] // Ns == idx[None, :] // Ns,
                                   0.0, NEG).astype(np.float32))
    idx2 = np.arange(T * BN)
    cnn_bias = jnp.asarray(np.where(idx2[:, None] % BN == idx2[None, :] % BN,
                                    0.0, NEG).astype(np.float32))

    def layer_norm(d):
        # torch: (d - mean) / d.std(-1)  with std's default ddof=1 (no eps).
        mean = jnp.mean(d, axis=-1, keepdims=True)
        c = d - mean
        var = jnp.sum(c * c, axis=-1, keepdims=True) * (1.0 / (E - 1))
        return c * lax.rsqrt(var)

    def kernel(x_ref, ew_ref, eb_ref, stb_ref, cnb_ref,
               swqkv_ref, sbqkv_ref, sw1_ref, sb1_ref,
               cwqkv_ref, cbqkv_ref, cwout_ref, cbout_ref, cwfin_ref, cbfin_ref,
               hw1_ref, hb1_ref, hw2_ref, hb2_ref,
               out_ref,
               qkv_scr, att_scr, xpad_scr, zp_scr, oatt_scr, po_scr, ocat_scr):
        f32 = jnp.float32

        # ---- embedding linear (recomputed per branch; tiny) ----
        xe = jnp.dot(x_ref[...], ew_ref[...], preferred_element_type=f32) + eb_ref[...]

        # ---- spatial-temporal multi-head attention (fused QKV + masked attn) ----
        qkv_scr[...] = (jnp.dot(xe, swqkv_ref[0], preferred_element_type=f32)
                        + sbqkv_ref[0])
        st_b = stb_ref[...]
        for h in range(H):
            qh = qkv_scr[:, h * E:(h + 1) * E]
            kh = qkv_scr[:, HE + h * E:HE + (h + 1) * E]
            vh = qkv_scr[:, 2 * HE + h * E:2 * HE + (h + 1) * E]
            s = lax.dot_general(qh, kh, (((1,), (1,)), ((), ())),
                                preferred_element_type=f32) * inv_scale_st + st_b
            s = s - jnp.max(s, axis=-1, keepdims=True)
            p = jnp.exp(s)
            p = p / jnp.sum(p, axis=-1, keepdims=True)
            att_scr[:, h * E:(h + 1) * E] = jnp.dot(p, vh, preferred_element_type=f32)
        y = jnp.dot(att_scr[...], sw1_ref[0], preferred_element_type=f32) + sb1_ref[0]
        x1 = layer_norm(y + xe)

        # ---- CNN patch attention ----
        if Ep == E:
            xpad_scr[...] = x1
        else:  # symmetric zero pad of the feature axis (torch F.pad)
            xpad_scr[...] = jnp.zeros((BN, Ep), f32)
            xpad_scr[:, pad_left:pad_left + E] = x1
        cw = cwqkv_ref[0]
        cb = cbqkv_ref[0]
        for t in range(T):  # Conv1d(1, Hp*C, kernel=P, stride=P) == per-patch linear
            patch = xpad_scr[:, t * P:(t + 1) * P]
            zp_scr[t * BN:(t + 1) * BN, :] = (
                jnp.dot(patch, cw, preferred_element_type=f32) + cb)
        cn_b = cnb_ref[...]
        for h in range(Hp):
            qh = zp_scr[:, h * C:(h + 1) * C]
            kh = zp_scr[:, HpC + h * C:HpC + (h + 1) * C]
            vh = zp_scr[:, 2 * HpC + h * C:2 * HpC + (h + 1) * C]
            s = lax.dot_general(qh, kh, (((1,), (1,)), ((), ())),
                                preferred_element_type=f32) * inv_scale_cnn + cn_b
            s = s - jnp.max(s, axis=-1, keepdims=True)
            p = jnp.exp(s)
            p = p / jnp.sum(p, axis=-1, keepdims=True)
            oatt_scr[:, h * C:(h + 1) * C] = jnp.dot(p, vh, preferred_element_type=f32)
        po_scr[...] = (jnp.dot(oatt_scr[...], cwout_ref[0],
                               preferred_element_type=f32) + cbout_ref[0])
        for t in range(T):  # re-pack patches back to (BN, Ep) row layout
            ocat_scr[:, t * P:(t + 1) * P] = po_scr[t * BN:(t + 1) * BN, :]
        z = (jnp.dot(ocat_scr[...], cwfin_ref[0], preferred_element_type=f32)
             + cbfin_ref[0])
        x2v = layer_norm(z + x1)

        # ---- output head: Linear -> LeakyReLU(0.01) -> Linear -> Sigmoid ----
        hh = jnp.dot(x2v, hw1_ref[0], preferred_element_type=f32) + hb1_ref[0]
        hh = jnp.where(hh > 0, hh, 0.01 * hh)
        hh = jnp.dot(hh, hw2_ref[0], preferred_element_type=f32) + hb2_ref[0]
        out_ref[0] = 1.0 / (1.0 + jnp.exp(-hh))

    def shared(arr):   # same block for both branches
        return pl.BlockSpec(tuple(arr.shape), lambda b: (0, 0))

    def per_branch(arr):  # (2, a, c) stacked -> block (1, a, c), branch b
        return pl.BlockSpec((1,) + tuple(arr.shape[1:]), lambda b: (b, 0, 0))

    branch_keys = ('st_wqkv', 'st_bqkv', 'st_w1', 'st_b1',
                   'c_wqkv', 'c_bqkv', 'c_wout', 'c_bout', 'c_wfin', 'c_bfin',
                   'h_w1', 'h_b1', 'h_w2', 'h_b2')
    args = [x2, fp['emb_w'], fp['emb_b'], st_bias, cnn_bias] + \
           [fp[k] for k in branch_keys]
    in_specs = ([shared(x2), shared(fp['emb_w']), shared(fp['emb_b']),
                 shared(st_bias), shared(cnn_bias)]
                + [per_branch(fp[k]) for k in branch_keys])

    return pl.pallas_call(
        kernel,
        grid=(2,),
        out_shape=jax.ShapeDtypeStruct((2, BN, W), jnp.float32),
        in_specs=in_specs,
        out_specs=pl.BlockSpec((1, BN, W), lambda b: (b, 0, 0)),
        scratch_shapes=[
            pltpu.VMEM((BN, 3 * HE), jnp.float32),       # fused ST QKV
            pltpu.VMEM((BN, HE), jnp.float32),           # ST attention output
            pltpu.VMEM((BN, Ep), jnp.float32),           # (padded) patch input
            pltpu.VMEM((T * BN, 3 * HpC), jnp.float32),  # fused patch QKV
            pltpu.VMEM((T * BN, HpC), jnp.float32),      # patch attention output
            pltpu.VMEM((T * BN, P), jnp.float32),        # lin_out result
            pltpu.VMEM((BN, Ep), jnp.float32),           # re-packed patches
        ],
        compiler_params=pltpu.CompilerParams(dimension_semantics=("parallel",)),
    )(*args)


# ----------------------------------------------------------------------------
# Host-side model glue
# ----------------------------------------------------------------------------

def my_model_fwd(fp, x, cfg):
    # x: (B, window_size, N_series)  - torch convention.
    B, W, Ns = x.shape
    x2 = x.transpose(0, 2, 1).reshape(B * Ns, W)            # (B*N, window)
    out = _fused_forward_call(fp, x2, cfg, B, Ns)           # (2, B*N, window)
    detail = out[0].reshape(B, Ns, W).transpose(0, 2, 1)    # (B, window, N)
    trend = out[1].reshape(B, Ns, W).transpose(0, 2, 1)
    return trend, detail


def prepare_fused_params(params, cfg):
    """Pre-concatenate QKV weights and stack the two branches (0=detail, 1=trend)."""
    def branch(layer_p, hw1, hb1, hw2, hb2):
        c = layer_p['cnn']
        return dict(
            st_wqkv=jnp.concatenate([layer_p['wq'], layer_p['wk'], layer_p['wv']], axis=1),
            st_bqkv=jnp.concatenate([layer_p['bq'], layer_p['bk'], layer_p['bv']])[None, :],
            st_w1=layer_p['w1'], st_b1=layer_p['b1'][None, :],
            c_wqkv=jnp.concatenate([c['wq'], c['wk'], c['wv']], axis=1),
            c_bqkv=jnp.concatenate([c['bq'], c['bk'], c['bv']])[None, :],
            c_wout=c['w_out'], c_bout=c['b_out'][None, :],
            c_wfin=c['w_final'], c_bfin=c['b_final'][None, :],
            h_w1=hw1, h_b1=hb1[None, :], h_w2=hw2, h_b2=hb2[None, :])

    # In the torch module every layer is applied to the SAME embedded x, so only
    # the last layer's output reaches the heads -> fusing just the last layer
    # produces an identical forward output (and avoids dead work for L > 1).
    d = branch(params['detail_layers'][-1], params['out1_w1'], params['out1_b1'],
               params['out1_w2'], params['out1_b2'])
    t = branch(params['trend_layers'][-1], params['out2_w1'], params['out2_b1'],
               params['out2_w2'], params['out2_b2'])
    fp = {k: jnp.stack([d[k], t[k]], axis=0) for k in d}
    fp['emb_w'] = params['emb_w']
    fp['emb_b'] = params['emb_b'][None, :]
    return fp


# ----------------------------------------------------------------------------
# Deterministic parameter initialization (PyTorch-style uniform(-1/sqrt(fan_in)))
# ----------------------------------------------------------------------------

def init_linear_params(key, fan_in, fan_out):
    k1, k2 = jax.random.split(key)
    bound = 1.0 / float(np.sqrt(fan_in))
    w = jax.random.uniform(k1, (fan_in, fan_out), jnp.float32, -bound, bound)
    b = jax.random.uniform(k2, (fan_out,), jnp.float32, -bound, bound)
    return w, b


def init_cnn_patch_attention(key, cfg):
    E, P = cfg['embedding_dim'], cfg['padding_size']
    C, Hp = cfg['cnn_embedding_dim'], cfg['patch_attention_heads']
    Ep = ((E + P - 1) // P) * P
    ks = jax.random.split(key, 5)
    p = {}
    p['wq'], p['bq'] = init_linear_params(ks[0], P, C * Hp)        # Q_CNN (conv as linear)
    p['wk'], p['bk'] = init_linear_params(ks[1], P, C * Hp)        # K_CNN
    p['wv'], p['bv'] = init_linear_params(ks[2], P, C * Hp)        # V_Lin
    p['w_out'], p['b_out'] = init_linear_params(ks[3], C * Hp, P)  # lin_out
    p['w_final'], p['b_final'] = init_linear_params(ks[4], Ep, E)  # lin_output
    return p


def init_st_transformer(key, cfg):
    E, H = cfg['embedding_dim'], cfg['spatial_temporal_heads']
    ks = jax.random.split(key, 5)
    p = {}
    p['wq'], p['bq'] = init_linear_params(ks[0], E, E * H)
    p['wk'], p['bk'] = init_linear_params(ks[1], E, E * H)
    p['wv'], p['bv'] = init_linear_params(ks[2], E, E * H)
    p['w1'], p['b1'] = init_linear_params(ks[3], E * H, E)
    p['cnn'] = init_cnn_patch_attention(ks[4], cfg)
    # Note: `out_linear` of the torch module is never used in forward -> omitted.
    return p


def init_model(key, cfg):
    W, E = cfg['window_size'], cfg['embedding_dim']
    L = cfg['n_spatial_temporal_layers']
    ks = jax.random.split(key, 2 * L + 5)
    p = {}
    p['emb_w'], p['emb_b'] = init_linear_params(ks[0], W, E)
    p['detail_layers'] = [init_st_transformer(ks[1 + i], cfg) for i in range(L)]
    p['trend_layers'] = [init_st_transformer(ks[1 + L + i], cfg) for i in range(L)]
    p['out1_w1'], p['out1_b1'] = init_linear_params(ks[1 + 2 * L], E, W)
    p['out1_w2'], p['out1_b2'] = init_linear_params(ks[2 + 2 * L], W, W)
    p['out2_w1'], p['out2_b1'] = init_linear_params(ks[3 + 2 * L], E, W)
    p['out2_w2'], p['out2_b2'] = init_linear_params(ks[4 + 2 * L], W, W)
    return p


# ----------------------------------------------------------------------------

if __name__ == "__main__":
    cfg = dict(window_size=16,
               embedding_dim=32,
               padding_size=8,
               cnn_embedding_dim=8,
               patch_attention_heads=2,
               spatial_temporal_heads=2,
               n_spatial_temporal_layers=1)

    key = jax.random.PRNGKey(0)
    pkey, xkey = jax.random.split(key)
    params = init_model(pkey, cfg)
    fused_params = prepare_fused_params(params, cfg)

    B, N_series = 2, 4
    x = jax.random.normal(xkey, (B, cfg['window_size'], N_series), jnp.float32)

    fwd = jax.jit(functools.partial(my_model_fwd, cfg=cfg))
    trend, detail = fwd(fused_params, x)
    jax.block_until_ready((trend, detail))

    assert trend.shape == (B, cfg['window_size'], N_series), trend.shape
    assert detail.shape == (B, cfg['window_size'], N_series), detail.shape
    assert bool(jnp.all(jnp.isfinite(trend))) and bool(jnp.all(jnp.isfinite(detail)))
    print("KERNEL_OK")
</pallas_src>

<mosaic_0001>
module attributes {stable_mosaic.version = 11 : i64} {
  func.func @kernel(%arg0: i32, %arg1: memref<8x16xf32, #tpu.memory_space<vmem>>, %arg2: memref<16x32xf32, #tpu.memory_space<vmem>>, %arg3: memref<1x32xf32, #tpu.memory_space<vmem>>, %arg4: memref<8x8xf32, #tpu.memory_space<vmem>>, %arg5: memref<32x32xf32, #tpu.memory_space<vmem>>, %arg6: memref<1x32x192xf32, #tpu.memory_space<vmem>>, %arg7: memref<1x1x192xf32, #tpu.memory_space<vmem>>, %arg8: memref<1x64x32xf32, #tpu.memory_space<vmem>>, %arg9: memref<1x1x32xf32, #tpu.memory_space<vmem>>, %arg10: memref<1x8x48xf32, #tpu.memory_space<vmem>>, %arg11: memref<1x1x48xf32, #tpu.memory_space<vmem>>, %arg12: memref<1x16x8xf32, #tpu.memory_space<vmem>>, %arg13: memref<1x1x8xf32, #tpu.memory_space<vmem>>, %arg14: memref<1x32x32xf32, #tpu.memory_space<vmem>>, %arg15: memref<1x1x32xf32, #tpu.memory_space<vmem>>, %arg16: memref<1x32x16xf32, #tpu.memory_space<vmem>>, %arg17: memref<1x1x16xf32, #tpu.memory_space<vmem>>, %arg18: memref<1x16x16xf32, #tpu.memory_space<vmem>>, %arg19: memref<1x1x16xf32, #tpu.memory_space<vmem>>, %arg20: memref<1x8x16xf32, #tpu.memory_space<vmem>>, %arg21: memref<8x192xf32, #tpu.memory_space<vmem>>, %arg22: memref<8x64xf32, #tpu.memory_space<vmem>>, %arg23: memref<8x32xf32, #tpu.memory_space<vmem>>, %arg24: memref<32x48xf32, #tpu.memory_space<vmem>>, %arg25: memref<32x16xf32, #tpu.memory_space<vmem>>, %arg26: memref<32x8xf32, #tpu.memory_space<vmem>>, %arg27: memref<8x32xf32, #tpu.memory_space<vmem>>) attributes {dimension_semantics = [#tpu.dimension_semantics<parallel>], iteration_bounds = array<i64: 2>, scalar_prefetch = 0 : i64, scratch_operands = 7 : i64, tpu.core_type = #tpu.core_type<tc>, window_params = [{pipeline_mode = #tpu.pipeline_mode<synchronous>, transform_indices = @transform_0, window_bounds = array<i64: 8, 16>}, {pipeline_mode = #tpu.pipeline_mode<synchronous>, transform_indices = @transform_1, window_bounds = array<i64: 16, 32>}, {pipeline_mode = #tpu.pipeline_mode<synchronous>, transform_indices = @transform_2, window_bounds = array<i64: 1, 32>}, {pipeline_mode = #tpu.pipeline_mode<synchronous>, transform_indices = @transform_3, window_bounds = array<i64: 8, 8>}, {pipeline_mode = #tpu.pipeline_mode<synchronous>, transform_indices = @transform_4, window_bounds = array<i64: 32, 32>}, {transform_indices = @transform_5, window_bounds = array<i64: 1, 32, 192>}, {transform_indices = @transform_6, window_bounds = array<i64: 1, 1, 192>}, {transform_indices = @transform_7, window_bounds = array<i64: 1, 64, 32>}, {transform_indices = @transform_8, window_bounds = array<i64: 1, 1, 32>}, {transform_indices = @transform_9, window_bounds = array<i64: 1, 8, 48>}, {transform_indices = @transform_10, window_bounds = array<i64: 1, 1, 48>}, {transform_indices = @transform_11, window_bounds = array<i64: 1, 16, 8>}, {transform_indices = @transform_12, window_bounds = array<i64: 1, 1, 8>}, {transform_indices = @transform_13, window_bounds = array<i64: 1, 32, 32>}, {transform_indices = @transform_14, window_bounds = array<i64: 1, 1, 32>}, {transform_indices = @transform_15, window_bounds = array<i64: 1, 32, 16>}, {transform_indices = @transform_16, window_bounds = array<i64: 1, 1, 16>}, {transform_indices = @transform_17, window_bounds = array<i64: 1, 16, 16>}, {transform_indices = @transform_18, window_bounds = array<i64: 1, 1, 16>}, {transform_indices = @transform_19, window_bounds = array<i64: 1, 8, 16>}]} {
    %c0 = arith.constant 0 : index
    %c0_0 = arith.constant 0 : index
    %0 = vector.load %arg1[%c0, %c0_0] : memref<8x16xf32, #tpu.memory_space<vmem>>, vector<8x16xf32>
    %c0_1 = arith.constant 0 : index
    %c0_2 = arith.constant 0 : index
    %1 = vector.load %arg2[%c0_1, %c0_2] : memref<16x32xf32, #tpu.memory_space<vmem>>, vector<16x32xf32>
    %cst = arith.constant dense<0.000000e+00> : vector<8x32xf32>
    %2 = tpu.matmul %0, %1, %cst {dimension_numbers = #tpu.dot_dimension_numbers<[1], [0], [0], [1], [0, 0, 1, 1], [], []>} : vector<8x16xf32>, vector<16x32xf32>, vector<8x32xf32> -> vector<8x32xf32>
    %c0_3 = arith.constant 0 : index
    %c0_4 = arith.constant 0 : index
    %3 = vector.load %arg3[%c0_3, %c0_4] : memref<1x32xf32, #tpu.memory_space<vmem>>, vector<1x32xf32>
    %4 = vector.broadcast %3 : vector<1x32xf32> to vector<8x32xf32>
    %5 = arith.addf %2, %4 : vector<8x32xf32>
    %c0_5 = arith.constant 0 : index
    %c0_6 = arith.constant 0 : index
    %c0_7 = arith.constant 0 : index
    %6 = vector.load %arg6[%c0_5, %c0_6, %c0_7] : memref<1x32x192xf32, #tpu.memory_space<vmem>>, vector<1x32x192xf32>
    %7 = vector.shape_cast %6 : vector<1x32x192xf32> to vector<32x192xf32>
    %cst_8 = arith.constant dense<0.000000e+00> : vector<8x192xf32>
    %8 = tpu.matmul %5, %7, %cst_8 {dimension_numbers = #tpu.dot_dimension_numbers<[1], [0], [0], [1], [0, 0, 1, 1], [], []>} : vector<8x32xf32>, vector<32x192xf32>, vector<8x192xf32> -> vector<8x192xf32>
    %c0_9 = arith.constant 0 : index
    %c0_10 = arith.constant 0 : index
    %c0_11 = arith.constant 0 : index
    %9 = vector.load %arg7[%c0_9, %c0_10, %c0_11] : memref<1x1x192xf32, #tpu.memory_space<vmem>>, vector<1x1x192xf32>
    %10 = vector.shape_cast %9 : vector<1x1x192xf32> to vector<1x192xf32>
    %11 = vector.broadcast %10 : vector<1x192xf32> to vector<8x192xf32>
    %12 = arith.addf %8, %11 : vector<8x192xf32>
    %c0_12 = arith.constant 0 : index
    %c0_13 = arith.constant 0 : index
    %13 = vector.load %arg21[%c0_12, %c0_13] : memref<8x192xf32, #tpu.memory_space<vmem>>, vector<8x192xf32>
    tpu.vector_store %arg21[%c0_12, %c0_13], %12 {strides = array<i32>} : memref<8x192xf32, #tpu.memory_space<vmem>>, vector<8x192xf32>,
    %c0_14 = arith.constant 0 : index
    %c0_15 = arith.constant 0 : index
    %14 = vector.load %arg4[%c0_14, %c0_15] : memref<8x8xf32, #tpu.memory_space<vmem>>, vector<8x8xf32>
    %c0_16 = arith.constant 0 : index
    %c0_17 = arith.constant 0 : index
    %15 = vector.load %arg21[%c0_16, %c0_17] : memref<8x192xf32, #tpu.memory_space<vmem>>, vector<8x32xf32>
    %c0_18 = arith.constant 0 : index
    %c64 = arith.constant 64 : index
    %16 = vector.load %arg21[%c0_18, %c64] : memref<8x192xf32, #tpu.memory_space<vmem>>, vector<8x32xf32>
    %c0_19 = arith.constant 0 : index
    %c128 = arith.constant 128 : index
    %17 = vector.load %arg21[%c0_19, %c128] : memref<8x192xf32, #tpu.memory_space<vmem>>, vector<8x32xf32>
    %cst_20 = arith.constant dense<0.000000e+00> : vector<8x8xf32>
    %18 = tpu.matmul %15, %16, %cst_20 {dimension_numbers = #tpu.dot_dimension_numbers<[1], [1], [0], [0], [0, 0, 1, 0], [], []>} : vector<8x32xf32>, vector<8x32xf32>, vector<8x8xf32> -> vector<8x8xf32>
    %cst_21 = arith.constant 3.125000e-02 : f32
    %19 = vector.broadcast %cst_21 : f32 to vector<8x8xf32>
    %20 = arith.mulf %18, %19 : vector<8x8xf32>
    %21 = arith.addf %20, %14 : vector<8x8xf32>
    %cst_22 = arith.constant dense<0xFF800000> : vector<8xf32>
    %22 = vector.multi_reduction <maximumf>, %21, %cst_22 [1] : vector<8x8xf32> to vector<8xf32>
    %23 = vector.shape_cast %22 : vector<8xf32> to vector<8x1xf32>
    %24 = vector.broadcast %23 : vector<8x1xf32> to vector<8x8xf32>
    %25 = arith.subf %21, %24 : vector<8x8xf32>
    %26 = math.exp %25 : vector<8x8xf32>
    %cst_23 = arith.constant dense<0.000000e+00> : vector<8xf32>
    %27 = vector.multi_reduction <add>, %26, %cst_23 [1] : vector<8x8xf32> to vector<8xf32>
    %28 = vector.shape_cast %27 : vector<8xf32> to vector<8x1xf32>
    %29 = vector.broadcast %28 : vector<8x1xf32> to vector<8x8xf32>
    %30 = arith.divf %26, %29 : vector<8x8xf32>
    %cst_24 = arith.constant dense<0.000000e+00> : vector<8x32xf32>
    %31 = tpu.matmul %30, %17, %cst_24 {dimension_numbers = #tpu.dot_dimension_numbers<[1], [0], [0], [1], [0, 0, 1, 1], [], []>} : vector<8x8xf32>, vector<8x32xf32>, vector<8x32xf32> -> vector<8x32xf32>
    %c0_25 = arith.constant 0 : index
    %c0_26 = arith.constant 0 : index
    %32 = vector.load %arg22[%c0_25, %c0_26] : memref<8x64xf32, #tpu.memory_space<vmem>>, vector<8x32xf32>
    tpu.vector_store %arg22[%c0_25, %c0_26], %31 {strides = array<i32>} : memref<8x64xf32, #tpu.memory_space<vmem>>, vector<8x32xf32>,
    %c0_27 = arith.constant 0 : index
    %c32 = arith.constant 32 : index
    %33 = vector.load %arg21[%c0_27, %c32] : memref<8x192xf32, #tpu.memory_space<vmem>>, vector<8x32xf32>
    %c0_28 = arith.constant 0 : index
    %c96 = arith.constant 96 : index
    %34 = vector.load %arg21[%c0_28, %c96] : memref<8x192xf32, #tpu.memory_space<vmem>>, vector<8x32xf32>
    %c0_29 = arith.constant 0 : index
    %c160 = arith.constant 160 : index
    %35 = vector.load %arg21[%c0_29, %c160] : memref<8x192xf32, #tpu.memory_space<vmem>>, vector<8x32xf32>
    %cst_30 = arith.constant dense<0.000000e+00> : vector<8x8xf32>
    %36 = tpu.matmul %33, %34, %cst_30 {dimension_numbers = #tpu.dot_dimension_numbers<[1], [1], [0], [0], [0, 0, 1, 0], [], []>} : vector<8x32xf32>, vector<8x32xf32>, vector<8x8xf32> -> vector<8x8xf32>
    %cst_31 = arith.constant 3.125000e-02 : f32
    %37 = vector.broadcast %cst_31 : f32 to vector<8x8xf32>
    %38 = arith.mulf %36, %37 : vector<8x8xf32>
    %39 = arith.addf %38, %14 : vector<8x8xf32>
    %cst_32 = arith.constant dense<0xFF800000> : vector<8xf32>
    %40 = vector.multi_reduction <maximumf>, %39, %cst_32 [1] : vector<8x8xf32> to vector<8xf32>
    %41 = vector.shape_cast %40 : vector<8xf32> to vector<8x1xf32>
    %42 = vector.broadcast %41 : vector<8x1xf32> to vector<8x8xf32>
    %43 = arith.subf %39, %42 : vector<8x8xf32>
    %44 = math.exp %43 : vector<8x8xf32>
    %cst_33 = arith.constant dense<0.000000e+00> : vector<8xf32>
    %45 = vector.multi_reduction <add>, %44, %cst_33 [1] : vector<8x8xf32> to vector<8xf32>
    %46 = vector.shape_cast %45 : vector<8xf32> to vector<8x1xf32>
    %47 = vector.broadcast %46 : vector<8x1xf32> to vector<8x8xf32>
    %48 = arith.divf %44, %47 : vector<8x8xf32>
    %cst_34 = arith.constant dense<0.000000e+00> : vector<8x32xf32>
    %49 = tpu.matmul %48, %35, %cst_34 {dimension_numbers = #tpu.dot_dimension_numbers<[1], [0], [0], [1], [0, 0, 1, 1], [], []>} : vector<8x8xf32>, vector<8x32xf32>, vector<8x32xf32> -> vector<8x32xf32>
    %c0_35 = arith.constant 0 : index
    %c32_36 = arith.constant 32 : index
    %50 = vector.load %arg22[%c0_35, %c32_36] : memref<8x64xf32, #tpu.memory_space<vmem>>, vector<8x32xf32>
    tpu.vector_store %arg22[%c0_35, %c32_36], %49 {strides = array<i32>} : memref<8x64xf32, #tpu.memory_space<vmem>>, vector<8x32xf32>,
    %c0_37 = arith.constant 0 : index
    %c0_38 = arith.constant 0 : index
    %51 = vector.load %arg22[%c0_37, %c0_38] : memref<8x64xf32, #tpu.memory_space<vmem>>, vector<8x64xf32>
    %c0_39 = arith.constant 0 : index
    %c0_40 = arith.constant 0 : index
    %c0_41 = arith.constant 0 : index
    %52 = vector.load %arg8[%c0_39, %c0_40, %c0_41] : memref<1x64x32xf32, #tpu.memory_space<vmem>>, vector<1x64x32xf32>
    %53 = vector.shape_cast %52 : vector<1x64x32xf32> to vector<64x32xf32>
    %cst_42 = arith.constant dense<0.000000e+00> : vector<8x32xf32>
    %54 = tpu.matmul %51, %53, %cst_42 {dimension_numbers = #tpu.dot_dimension_numbers<[1], [0], [0], [1], [0, 0, 1, 1], [], []>} : vector<8x64xf32>, vector<64x32xf32>, vector<8x32xf32> -> vector<8x32xf32>
    %c0_43 = arith.constant 0 : index
    %c0_44 = arith.constant 0 : index
    %c0_45 = arith.constant 0 : index
    %55 = vector.load %arg9[%c0_43, %c0_44, %c0_45] : memref<1x1x32xf32, #tpu.memory_space<vmem>>, vector<1x1x32xf32>
    %56 = vector.shape_cast %55 : vector<1x1x32xf32> to vector<1x32xf32>
    %57 = vector.broadcast %56 : vector<1x32xf32> to vector<8x32xf32>
    %58 = arith.addf %54, %57 : vector<8x32xf32>
    %59 = arith.addf %58, %5 : vector<8x32xf32>
    %cst_46 = arith.constant dense<0.000000e+00> : vector<8xf32>
    %60 = vector.multi_reduction <add>, %59, %cst_46 [1] : vector<8x32xf32> to vector<8xf32>
    %61 = vector.shape_cast %60 : vector<8xf32> to vector<8x1xf32>
    %cst_47 = arith.constant 3.200000e+01 : f32
    %62 = vector.broadcast %cst_47 : f32 to vector<8x1xf32>
    %63 = arith.divf %61, %62 : vector<8x1xf32>
    %64 = vector.broadcast %63 : vector<8x1xf32> to vector<8x32xf32>
    %65 = arith.subf %59, %64 : vector<8x32xf32>
    %66 = arith.mulf %65, %65 : vector<8x32xf32>
    %cst_48 = arith.constant dense<0.000000e+00> : vector<8xf32>
    %67 = vector.multi_reduction <add>, %66, %cst_48 [1] : vector<8x32xf32> to vector<8xf32>
    %68 = vector.shape_cast %67 : vector<8xf32> to vector<8x1xf32>
    %cst_49 = arith.constant 0.0322580636 : f32
    %69 = vector.broadcast %cst_49 : f32 to vector<8x1xf32>
    %70 = arith.mulf %68, %69 : vector<8x1xf32>
    %71 = math.rsqrt %70 : vector<8x1xf32>
    %72 = vector.broadcast %71 : vector<8x1xf32> to vector<8x32xf32>
    %73 = arith.mulf %65, %72 : vector<8x32xf32>
    %c0_50 = arith.constant 0 : index
    %c0_51 = arith.constant 0 : index
    %74 = vector.load %arg23[%c0_50, %c0_51] : memref<8x32xf32, #tpu.memory_space<vmem>>, vector<8x32xf32>
    tpu.vector_store %arg23[%c0_50, %c0_51], %73 {strides = array<i32>} : memref<8x32xf32, #tpu.memory_space<vmem>>, vector<8x32xf32>,
    %c0_52 = arith.constant 0 : index
    %c0_53 = arith.constant 0 : index
    %c0_54 = arith.constant 0 : index
    %75 = vector.load %arg10[%c0_52, %c0_53, %c0_54] : memref<1x8x48xf32, #tpu.memory_space<vmem>>, vector<1x8x48xf32>
    %76 = vector.shape_cast %75 : vector<1x8x48xf32> to vector<8x48xf32>
    %c0_55 = arith.constant 0 : index
    %c0_56 = arith.constant 0 : index
    %c0_57 = arith.constant 0 : index
    %77 = vector.load %arg11[%c0_55, %c0_56, %c0_57] : memref<1x1x48xf32, #tpu.memory_space<vmem>>, vector<1x1x48xf32>
    %78 = vector.shape_cast %77 : vector<1x1x48xf32> to vector<1x48xf32>
    %c0_58 = arith.constant 0 : index
    %c0_59 = arith.constant 0 : index
    %79 = vector.load %arg23[%c0_58, %c0_59] : memref<8x32xf32, #tpu.memory_space<vmem>>, vector<8x8xf32>
    %cst_60 = arith.constant dense<0.000000e+00> : vector<8x48xf32>
    %80 = tpu.matmul %79, %76, %cst_60 {dimension_numbers = #tpu.dot_dimension_numbers<[1], [0], [0], [1], [0, 0, 1, 1], [], []>} : vector<8x8xf32>, vector<8x48xf32>, vector<8x48xf32> -> vector<8x48xf32>
    %81 = vector.broadcast %78 : vector<1x48xf32> to vector<8x48xf32>
    %82 = arith.addf %80, %81 : vector<8x48xf32>
    %c0_61 = arith.constant 0 : index
    %c0_62 = arith.constant 0 : index
    %83 = vector.load %arg24[%c0_61, %c0_62] : memref<32x48xf32, #tpu.memory_space<vmem>>, vector<8x48xf32>
    tpu.vector_store %arg24[%c0_61, %c0_62], %82 {strides = array<i32>} : memref<32x48xf32, #tpu.memory_space<vmem>>, vector<8x48xf32>,
    %c0_63 = arith.constant 0 : index
    %c8 = arith.constant 8 : index
    %84 = vector.load %arg23[%c0_63, %c8] : memref<8x32xf32, #tpu.memory_space<vmem>>, vector<8x8xf32>
    %cst_64 = arith.constant dense<0.000000e+00> : vector<8x48xf32>
    %85 = tpu.matmul %84, %76, %cst_64 {dimension_numbers = #tpu.dot_dimension_numbers<[1], [0], [0], [1], [0, 0, 1, 1], [], []>} : vector<8x8xf32>, vector<8x48xf32>, vector<8x48xf32> -> vector<8x48xf32>
    %86 = vector.broadcast %78 : vector<1x48xf32> to vector<8x48xf32>
    %87 = arith.addf %85, %86 : vector<8x48xf32>
    %c8_65 = arith.constant 8 : index
    %c0_66 = arith.constant 0 : index
    %88 = vector.load %arg24[%c8_65, %c0_66] : memref<32x48xf32, #tpu.memory_space<vmem>>, vector<8x48xf32>
    tpu.vector_store %arg24[%c8_65, %c0_66], %87 {strides = array<i32>} : memref<32x48xf32, #tpu.memory_space<vmem>>, vector<8x48xf32>,
    %c0_67 = arith.constant 0 : index
    %c16 = arith.constant 16 : index
    %89 = vector.load %arg23[%c0_67, %c16] : memref<8x32xf32, #tpu.memory_space<vmem>>, vector<8x8xf32>
    %cst_68 = arith.constant dense<0.000000e+00> : vector<8x48xf32>
    %90 = tpu.matmul %89, %76, %cst_68 {dimension_numbers = #tpu.dot_dimension_numbers<[1], [0], [0], [1], [0, 0, 1, 1], [], []>} : vector<8x8xf32>, vector<8x48xf32>, vector<8x48xf32> -> vector<8x48xf32>
    %91 = vector.broadcast %78 : vector<1x48xf32> to vector<8x48xf32>
    %92 = arith.addf %90, %91 : vector<8x48xf32>
    %c16_69 = arith.constant 16 : index
    %c0_70 = arith.constant 0 : index
    %93 = vector.load %arg24[%c16_69, %c0_70] : memref<32x48xf32, #tpu.memory_space<vmem>>, vector<8x48xf32>
    tpu.vector_store %arg24[%c16_69, %c0_70], %92 {strides = array<i32>} : memref<32x48xf32, #tpu.memory_space<vmem>>, vector<8x48xf32>,
    %c0_71 = arith.constant 0 : index
    %c24 = arith.constant 24 : index
    %94 = vector.load %arg23[%c0_71, %c24] : memref<8x32xf32, #tpu.memory_space<vmem>>, vector<8x8xf32>
    %cst_72 = arith.constant dense<0.000000e+00> : vector<8x48xf32>
    %95 = tpu.matmul %94, %76, %cst_72 {dimension_numbers = #tpu.dot_dimension_numbers<[1], [0], [0], [1], [0, 0, 1, 1], [], []>} : vector<8x8xf32>, vector<8x48xf32>, vector<8x48xf32> -> vector<8x48xf32>
    %96 = vector.broadcast %78 : vector<1x48xf32> to vector<8x48xf32>
    %97 = arith.addf %95, %96 : vector<8x48xf32>
    %c24_73 = arith.constant 24 : index
    %c0_74 = arith.constant 0 : index
    %98 = vector.load %arg24[%c24_73, %c0_74] : memref<32x48xf32, #tpu.memory_space<vmem>>, vector<8x48xf32>
    tpu.vector_store %arg24[%c24_73, %c0_74], %97 {strides = array<i32>} : memref<32x48xf32, #tpu.memory_space<vmem>>, vector<8x48xf32>,
    %c0_75 = arith.constant 0 : index
    %c0_76 = arith.constant 0 : index
    %99 = vector.load %arg5[%c0_75, %c0_76] : memref<32x32xf32, #tpu.memory_space<vmem>>, vector<32x32xf32>
    %c0_77 = arith.constant 0 : index
    %c0_78 = arith.constant 0 : index
    %100 = vector.load %arg24[%c0_77, %c0_78] : memref<32x48xf32, #tpu.memory_space<vmem>>, vector<32x8xf32>
    %c0_79 = arith.constant 0 : index
    %c16_80 = arith.constant 16 : index
    %101 = vector.load %arg24[%c0_79, %c16_80] : memref<32x48xf32, #tpu.memory_space<vmem>>, vector<32x8xf32>
    %c0_81 = arith.constant 0 : index
    %c32_82 = arith.constant 32 : index
    %102 = vector.load %arg24[%c0_81, %c32_82] : memref<32x48xf32, #tpu.memory_space<vmem>>, vector<32x8xf32>
    %cst_83 = arith.constant dense<0.000000e+00> : vector<32x32xf32>
    %103 = tpu.matmul %100, %101, %cst_83 {dimension_numbers = #tpu.dot_dimension_numbers<[1], [1], [0], [0], [0, 0, 1, 0], [], []>} : vector<32x8xf32>, vector<32x8xf32>, vector<32x32xf32> -> vector<32x32xf32>
    %cst_84 = arith.constant 0.176776692 : f32
    %104 = vector.broadcast %cst_84 : f32 to vector<32x32xf32>
    %105 = arith.mulf %103, %104 : vector<32x32xf32>
    %106 = arith.addf %105, %99 : vector<32x32xf32>
    %cst_85 = arith.constant dense<0xFF800000> : vector<32xf32>
    %107 = vector.multi_reduction <maximumf>, %106, %cst_85 [1] : vector<32x32xf32> to vector<32xf32>
    %108 = vector.shape_cast %107 : vector<32xf32> to vector<32x1xf32>
    %109 = vector.broadcast %108 : vector<32x1xf32> to vector<32x32xf32>
    %110 = arith.subf %106, %109 : vector<32x32xf32>
    %111 = math.exp %110 : vector<32x32xf32>
    %cst_86 = arith.constant dense<0.000000e+00> : vector<32xf32>
    %112 = vector.multi_reduction <add>, %111, %cst_86 [1] : vector<32x32xf32> to vector<32xf32>
    %113 = vector.shape_cast %112 : vector<32xf32> to vector<32x1xf32>
    %114 = vector.broadcast %113 : vector<32x1xf32> to vector<32x32xf32>
    %115 = arith.divf %111, %114 : vector<32x32xf32>
    %cst_87 = arith.constant dense<0.000000e+00> : vector<32x8xf32>
    %116 = tpu.matmul %115, %102, %cst_87 {dimension_numbers = #tpu.dot_dimension_numbers<[1], [0], [0], [1], [0, 0, 1, 1], [], []>} : vector<32x32xf32>, vector<32x8xf32>, vector<32x8xf32> -> vector<32x8xf32>
    %c0_88 = arith.constant 0 : index
    %c0_89 = arith.constant 0 : index
    %117 = vector.load %arg25[%c0_88, %c0_89] : memref<32x16xf32, #tpu.memory_space<vmem>>, vector<32x8xf32>
    tpu.vector_store %arg25[%c0_88, %c0_89], %116 {strides = array<i32>} : memref<32x16xf32, #tpu.memory_space<vmem>>, vector<32x8xf32>,
    %c0_90 = arith.constant 0 : index
    %c8_91 = arith.constant 8 : index
    %118 = vector.load %arg24[%c0_90, %c8_91] : memref<32x48xf32, #tpu.memory_space<vmem>>, vector<32x8xf32>
    %c0_92 = arith.constant 0 : index
    %c24_93 = arith.constant 24 : index
    %119 = vector.load %arg24[%c0_92, %c24_93] : memref<32x48xf32, #tpu.memory_space<vmem>>, vector<32x8xf32>
    %c0_94 = arith.constant 0 : index
    %c40 = arith.constant 40 : index
    %120 = vector.load %arg24[%c0_94, %c40] : memref<32x48xf32, #tpu.memory_space<vmem>>, vector<32x8xf32>
    %cst_95 = arith.constant dense<0.000000e+00> : vector<32x32xf32>
    %121 = tpu.matmul %118, %119, %cst_95 {dimension_numbers = #tpu.dot_dimension_numbers<[1], [1], [0], [0], [0, 0, 1, 0], [], []>} : vector<32x8xf32>, vector<32x8xf32>, vector<32x32xf32> -> vector<32x32xf32>
    %cst_96 = arith.constant 0.176776692 : f32
    %122 = vector.broadcast %cst_96 : f32 to vector<32x32xf32>
    %123 = arith.mulf %121, %122 : vector<32x32xf32>
    %124 = arith.addf %123, %99 : vector<32x32xf32>
    %cst_97 = arith.constant dense<0xFF800000> : vector<32xf32>
    %125 = vector.multi_reduction <maximumf>, %124, %cst_97 [1] : vector<32x32xf32> to vector<32xf32>
    %126 = vector.shape_cast %125 : vector<32xf32> to vector<32x1xf32>
    %127 = vector.broadcast %126 : vector<32x1xf32> to vector<32x32xf32>
    %128 = arith.subf %124, %127 : vector<32x32xf32>
    %129 = math.exp %128 : vector<32x32xf32>
    %cst_98 = arith.constant dense<0.000000e+00> : vector<32xf32>
    %130 = vector.multi_reduction <add>, %129, %cst_98 [1] : vector<32x32xf32> to vector<32xf32>
    %131 = vector.shape_cast %130 : vector<32xf32> to vector<32x1xf32>
    %132 = vector.broadcast %131 : vector<32x1xf32> to vector<32x32xf32>
    %133 = arith.divf %129, %132 : vector<32x32xf32>
    %cst_99 = arith.constant dense<0.000000e+00> : vector<32x8xf32>
    %134 = tpu.matmul %133, %120, %cst_99 {dimension_numbers = #tpu.dot_dimension_numbers<[1], [0], [0], [1], [0, 0, 1, 1], [], []>} : vector<32x32xf32>, vector<32x8xf32>, vector<32x8xf32> -> vector<32x8xf32>
    %c0_100 = arith.constant 0 : index
    %c8_101 = arith.constant 8 : index
    %135 = vector.load %arg25[%c0_100, %c8_101] : memref<32x16xf32, #tpu.memory_space<vmem>>, vector<32x8xf32>
    tpu.vector_store %arg25[%c0_100, %c8_101], %134 {strides = array<i32>} : memref<32x16xf32, #tpu.memory_space<vmem>>, vector<32x8xf32>,
    %c0_102 = arith.constant 0 : index
    %c0_103 = arith.constant 0 : index
    %136 = vector.load %arg25[%c0_102, %c0_103] : memref<32x16xf32, #tpu.memory_space<vmem>>, vector<32x16xf32>
    %c0_104 = arith.constant 0 : index
    %c0_105 = arith.constant 0 : index
    %c0_106 = arith.constant 0 : index
    %137 = vector.load %arg12[%c0_104, %c0_105, %c0_106] : memref<1x16x8xf32, #tpu.memory_space<vmem>>, vector<1x16x8xf32>
    %138 = vector.shape_cast %137 : vector<1x16x8xf32> to vector<16x8xf32>
    %cst_107 = arith.constant dense<0.000000e+00> : vector<32x8xf32>
    %139 = tpu.matmul %136, %138, %cst_107 {dimension_numbers = #tpu.dot_dimension_numbers<[1], [0], [0], [1], [0, 0, 1, 1], [], []>} : vector<32x16xf32>, vector<16x8xf32>, vector<32x8xf32> -> vector<32x8xf32>
    %c0_108 = arith.constant 0 : index
    %c0_109 = arith.constant 0 : index
    %c0_110 = arith.constant 0 : index
    %140 = vector.load %arg13[%c0_108, %c0_109, %c0_110] : memref<1x1x8xf32, #tpu.memory_space<vmem>>, vector<1x1x8xf32>
    %141 = vector.shape_cast %140 : vector<1x1x8xf32> to vector<1x8xf32>
    %142 = vector.broadcast %141 : vector<1x8xf32> to vector<32x8xf32>
    %143 = arith.addf %139, %142 : vector<32x8xf32>
    %c0_111 = arith.constant 0 : index
    %c0_112 = arith.constant 0 : index
    %144 = vector.load %arg26[%c0_111, %c0_112] : memref<32x8xf32, #tpu.memory_space<vmem>>, vector<32x8xf32>
    tpu.vector_store %arg26[%c0_111, %c0_112], %143 {strides = array<i32>} : memref<32x8xf32, #tpu.memory_space<vmem>>, vector<32x8xf32>,
    %c0_113 = arith.constant 0 : index
    %c0_114 = arith.constant 0 : index
    %145 = vector.load %arg26[%c0_113, %c0_114] : memref<32x8xf32, #tpu.memory_space<vmem>>, vector<8x8xf32>
    %c0_115 = arith.constant 0 : index
    %c0_116 = arith.constant 0 : index
    %146 = vector.load %arg27[%c0_115, %c0_116] : memref<8x32xf32, #tpu.memory_space<vmem>>, vector<8x8xf32>
    tpu.vector_store %arg27[%c0_115, %c0_116], %145 {strides = array<i32>} : memref<8x32xf32, #tpu.memory_space<vmem>>, vector<8x8xf32>,
    %c8_117 = arith.constant 8 : index
    %c0_118 = arith.constant 0 : index
    %147 = vector.load %arg26[%c8_117, %c0_118] : memref<32x8xf32, #tpu.memory_space<vmem>>, vector<8x8xf32>
    %c0_119 = arith.constant 0 : index
    %c8_120 = arith.constant 8 : index
    %148 = vector.load %arg27[%c0_119, %c8_120] : memref<8x32xf32, #tpu.memory_space<vmem>>, vector<8x8xf32>
    tpu.vector_store %arg27[%c0_119, %c8_120], %147 {strides = array<i32>} : memref<8x32xf32, #tpu.memory_space<vmem>>, vector<8x8xf32>,
    %c16_121 = arith.constant 16 : index
    %c0_122 = arith.constant 0 : index
    %149 = vector.load %arg26[%c16_121, %c0_122] : memref<32x8xf32, #tpu.memory_space<vmem>>, vector<8x8xf32>
    %c0_123 = arith.constant 0 : index
    %c16_124 = arith.constant 16 : index
    %150 = vector.load %arg27[%c0_123, %c16_124] : memref<8x32xf32, #tpu.memory_space<vmem>>, vector<8x8xf32>
    tpu.vector_store %arg27[%c0_123, %c16_124], %149 {strides = array<i32>} : memref<8x32xf32, #tpu.memory_space<vmem>>, vector<8x8xf32>,
    %c24_125 = arith.constant 24 : index
    %c0_126 = arith.constant 0 : index
    %151 = vector.load %arg26[%c24_125, %c0_126] : memref<32x8xf32, #tpu.memory_space<vmem>>, vector<8x8xf32>
    %c0_127 = arith.constant 0 : index
    %c24_128 = arith.constant 24 : index
    %152 = vector.load %arg27[%c0_127, %c24_128] : memref<8x32xf32, #tpu.memory_space<vmem>>, vector<8x8xf32>
    tpu.vector_store %arg27[%c0_127, %c24_128], %151 {strides = array<i32>} : memref<8x32xf32, #tpu.memory_space<vmem>>, vector<8x8xf32>,
    %c0_129 = arith.constant 0 : index
    %c0_130 = arith.constant 0 : index
    %153 = vector.load %arg27[%c0_129, %c0_130] : memref<8x32xf32, #tpu.memory_space<vmem>>, vector<8x32xf32>
    %c0_131 = arith.constant 0 : index
    %c0_132 = arith.constant 0 : index
    %c0_133 = arith.constant 0 : index
    %154 = vector.load %arg14[%c0_131, %c0_132, %c0_133] : memref<1x32x32xf32, #tpu.memory_space<vmem>>, vector<1x32x32xf32>
    %155 = vector.shape_cast %154 : vector<1x32x32xf32> to vector<32x32xf32>
    %cst_134 = arith.constant dense<0.000000e+00> : vector<8x32xf32>
    %156 = tpu.matmul %153, %155, %cst_134 {dimension_numbers = #tpu.dot_dimension_numbers<[1], [0], [0], [1], [0, 0, 1, 1], [], []>} : vector<8x32xf32>, vector<32x32xf32>, vector<8x32xf32> -> vector<8x32xf32>
    %c0_135 = arith.constant 0 : index
    %c0_136 = arith.constant 0 : index
    %c0_137 = arith.constant 0 : index
    %157 = vector.load %arg15[%c0_135, %c0_136, %c0_137] : memref<1x1x32xf32, #tpu.memory_space<vmem>>, vector<1x1x32xf32>
    %158 = vector.shape_cast %157 : vector<1x1x32xf32> to vector<1x32xf32>
    %159 = vector.broadcast %158 : vector<1x32xf32> to vector<8x32xf32>
    %160 = arith.addf %156, %159 : vector<8x32xf32>
    %161 = arith.addf %160, %73 : vector<8x32xf32>
    %cst_138 = arith.constant dense<0.000000e+00> : vector<8xf32>
    %162 = vector.multi_reduction <add>, %161, %cst_138 [1] : vector<8x32xf32> to vector<8xf32>
    %163 = vector.shape_cast %162 : vector<8xf32> to vector<8x1xf32>
    %cst_139 = arith.constant 3.200000e+01 : f32
    %164 = vector.broadcast %cst_139 : f32 to vector<8x1xf32>
    %165 = arith.divf %163, %164 : vector<8x1xf32>
    %166 = vector.broadcast %165 : vector<8x1xf32> to vector<8x32xf32>
    %167 = arith.subf %161, %166 : vector<8x32xf32>
    %168 = arith.mulf %167, %167 : vector<8x32xf32>
    %cst_140 = arith.constant dense<0.000000e+00> : vector<8xf32>
    %169 = vector.multi_reduction <add>, %168, %cst_140 [1] : vector<8x32xf32> to vector<8xf32>
    %170 = vector.shape_cast %169 : vector<8xf32> to vector<8x1xf32>
    %cst_141 = arith.constant 0.0322580636 : f32
    %171 = vector.broadcast %cst_141 : f32 to vector<8x1xf32>
    %172 = arith.mulf %170, %171 : vector<8x1xf32>
    %173 = math.rsqrt %172 : vector<8x1xf32>
    %174 = vector.broadcast %173 : vector<8x1xf32> to vector<8x32xf32>
    %175 = arith.mulf %167, %174 : vector<8x32xf32>
    %c0_142 = arith.constant 0 : index
    %c0_143 = arith.constant 0 : index
    %c0_144 = arith.constant 0 : index
    %176 = vector.load %arg16[%c0_142, %c0_143, %c0_144] : memref<1x32x16xf32, #tpu.memory_space<vmem>>, vector<1x32x16xf32>
    %177 = vector.shape_cast %176 : vector<1x32x16xf32> to vector<32x16xf32>
    %cst_145 = arith.constant dense<0.000000e+00> : vector<8x16xf32>
    %178 = tpu.matmul %175, %177, %cst_145 {dimension_numbers = #tpu.dot_dimension_numbers<[1], [0], [0], [1], [0, 0, 1, 1], [], []>} : vector<8x32xf32>, vector<32x16xf32>, vector<8x16xf32> -> vector<8x16xf32>
    %c0_146 = arith.constant 0 : index
    %c0_147 = arith.constant 0 : index
    %c0_148 = arith.constant 0 : index
    %179 = vector.load %arg17[%c0_146, %c0_147, %c0_148] : memref<1x1x16xf32, #tpu.memory_space<vmem>>, vector<1x1x16xf32>
    %180 = vector.shape_cast %179 : vector<1x1x16xf32> to vector<1x16xf32>
    %181 = vector.broadcast %180 : vector<1x16xf32> to vector<8x16xf32>
    %182 = arith.addf %178, %181 : vector<8x16xf32>
    %cst_149 = arith.constant 0.000000e+00 : f32
    %183 = vector.broadcast %cst_149 : f32 to vector<8x16xf32>
    %184 = arith.cmpf ogt, %182, %183 : vector<8x16xf32>
    %cst_150 = arith.constant 0.00999999977 : f32
    %185 = vector.broadcast %cst_150 : f32 to vector<8x16xf32>
    %186 = arith.mulf %185, %182 : vector<8x16xf32>
    %187 = arith.select %184, %182, %186 : vector<8x16xi1>, vector<8x16xf32>
    %c0_151 = arith.constant 0 : index
    %c0_152 = arith.constant 0 : index
    %c0_153 = arith.constant 0 : index
    %188 = vector.load %arg18[%c0_151, %c0_152, %c0_153] : memref<1x16x16xf32, #tpu.memory_space<vmem>>, vector<1x16x16xf32>
    %189 = vector.shape_cast %188 : vector<1x16x16xf32> to vector<16x16xf32>
    %cst_154 = arith.constant dense<0.000000e+00> : vector<8x16xf32>
    %190 = tpu.matmul %187, %189, %cst_154 {dimension_numbers = #tpu.dot_dimension_numbers<[1], [0], [0], [1], [0, 0, 1, 1], [], []>} : vector<8x16xf32>, vector<16x16xf32>, vector<8x16xf32> -> vector<8x16xf32>
    %c0_155 = arith.constant 0 : index
    %c0_156 = arith.constant 0 : index
    %c0_157 = arith.constant 0 : index
    %191 = vector.load %arg19[%c0_155, %c0_156, %c0_157] : memref<1x1x16xf32, #tpu.memory_space<vmem>>, vector<1x1x16xf32>
    %192 = vector.shape_cast %191 : vector<1x1x16xf32> to vector<1x16xf32>
    %193 = vector.broadcast %192 : vector<1x16xf32> to vector<8x16xf32>
    %194 = arith.addf %190, %193 : vector<8x16xf32>
    %cst_158 = arith.constant 0.000000e+00 : f32
    %195 = vector.broadcast %cst_158 : f32 to vector<8x16xf32>
    %196 = arith.subf %195, %194 : vector<8x16xf32>
    %197 = math.exp %196 : vector<8x16xf32>
    %cst_159 = arith.constant 1.000000e+00 : f32
    %198 = vector.broadcast %cst_159 : f32 to vector<8x16xf32>
    %199 = arith.addf %198, %197 : vector<8x16xf32>
    %cst_160 = arith.constant 1.000000e+00 : f32
    %200 = vector.broadcast %cst_160 : f32 to vector<8x16xf32>
    %201 = arith.divf %200, %199 : vector<8x16xf32>
    %c0_161 = arith.constant 0 : index
    %c0_162 = arith.constant 0 : index
    %c0_163 = arith.constant 0 : index
    %202 = vector.load %arg20[%c0_161, %c0_162, %c0_163] : memref<1x8x16xf32, #tpu.memory_space<vmem>>, vector<1x8x16xf32>
    %203 = vector.shape_cast %202 : vector<1x8x16xf32> to vector<8x16xf32>
    %204 = vector.shape_cast %201 : vector<8x16xf32> to vector<1x8x16xf32>
    tpu.vector_store %arg20[%c0_161, %c0_162, %c0_163], %204 {strides = array<i32>} : memref<1x8x16xf32, #tpu.memory_space<vmem>>, vector<1x8x16xf32>,
    return
  }
  func.func @transform_0(%arg0: i32) -> (i32, i32) {
    %c0_i32 = arith.constant 0 : i32
    %c0_i32_0 = arith.constant 0 : i32
    %c0_i32_1 = arith.constant 0 : i32
    return %c0_i32, %c0_i32_0 : i32, i32
  }
  func.func @transform_1(%arg0: i32) -> (i32, i32) {
    %c0_i32 = arith.constant 0 : i32
    %c0_i32_0 = arith.constant 0 : i32
    %c0_i32_1 = arith.constant 0 : i32
    return %c0_i32, %c0_i32_0 : i32, i32
  }
  func.func @transform_2(%arg0: i32) -> (i32, i32) {
    %c0_i32 = arith.constant 0 : i32
    %c0_i32_0 = arith.constant 0 : i32
    %c0_i32_1 = arith.constant 0 : i32
    return %c0_i32, %c0_i32_0 : i32, i32
  }
  func.func @transform_3(%arg0: i32) -> (i32, i32) {
    %c0_i32 = arith.constant 0 : i32
    %c0_i32_0 = arith.constant 0 : i32
    %c0_i32_1 = arith.constant 0 : i32
    return %c0_i32, %c0_i32_0 : i32, i32
  }
  func.func @transform_4(%arg0: i32) -> (i32, i32) {
    %c0_i32 = arith.constant 0 : i32
    %c0_i32_0 = arith.constant 0 : i32
    %c0_i32_1 = arith.constant 0 : i32
    return %c0_i32, %c0_i32_0 : i32, i32
  }
  func.func @transform_5(%arg0: i32) -> (i32, i32, i32) {
    %c0_i32 = arith.constant 0 : i32
    %c0_i32_0 = arith.constant 0 : i32
    %c0_i32_1 = arith.constant 0 : i32
    return %arg0, %c0_i32, %c0_i32_0 : i32, i32, i32
  }
  func.func @transform_6(%arg0: i32) -> (i32, i32, i32) {
    %c0_i32 = arith.constant 0 : i32
    %c0_i32_0 = arith.constant 0 : i32
    %c0_i32_1 = arith.constant 0 : i32
    return %arg0, %c0_i32, %c0_i32_0 : i32, i32, i32
  }
  func.func @transform_7(%arg0: i32) -> (i32, i32, i32) {
    %c0_i32 = arith.constant 0 : i32
    %c0_i32_0 = arith.constant 0 : i32
    %c0_i32_1 = arith.constant 0 : i32
    return %arg0, %c0_i32, %c0_i32_0 : i32, i32, i32
  }
  func.func @transform_8(%arg0: i32) -> (i32, i32, i32) {
    %c0_i32 = arith.constant 0 : i32
    %c0_i32_0 = arith.constant 0 : i32
    %c0_i32_1 = arith.constant 0 : i32
    return %arg0, %c0_i32, %c0_i32_0 : i32, i32, i32
  }
  func.func @transform_9(%arg0: i32) -> (i32, i32, i32) {
    %c0_i32 = arith.constant 0 : i32
    %c0_i32_0 = arith.constant 0 : i32
    %c0_i32_1 = arith.constant 0 : i32
    return %arg0, %c0_i32, %c0_i32_0 : i32, i32, i32
  }
  func.func @transform_10(%arg0: i32) -> (i32, i32, i32) {
    %c0_i32 = arith.constant 0 : i32
    %c0_i32_0 = arith.constant 0 : i32
    %c0_i32_1 = arith.constant 0 : i32
    return %arg0, %c0_i32, %c0_i32_0 : i32, i32, i32
  }
  func.func @transform_11(%arg0: i32) -> (i32, i32, i32) {
    %c0_i32 = arith.constant 0 : i32
    %c0_i32_0 = arith.constant 0 : i32
    %c0_i32_1 = arith.constant 0 : i32
    return %arg0, %c0_i32, %c0_i32_0 : i32, i32, i32
  }
  func.func @transform_12(%arg0: i32) -> (i32, i32, i32) {
    %c0_i32 = arith.constant 0 : i32
    %c0_i32_0 = arith.constant 0 : i32
    %c0_i32_1 = arith.constant 0 : i32
    return %arg0, %c0_i32, %c0_i32_0 : i32, i32, i32
  }
  func.func @transform_13(%arg0: i32) -> (i32, i32, i32) {
    %c0_i32 = arith.constant 0 : i32
    %c0_i32_0 = arith.constant 0 : i32
    %c0_i32_1 = arith.constant 0 : i32
    return %arg0, %c0_i32, %c0_i32_0 : i32, i32, i32
  }
  func.func @transform_14(%arg0: i32) -> (i32, i32, i32) {
    %c0_i32 = arith.constant 0 : i32
    %c0_i32_0 = arith.constant 0 : i32
    %c0_i32_1 = arith.constant 0 : i32
    return %arg0, %c0_i32, %c0_i32_0 : i32, i32, i32
  }
  func.func @transform_15(%arg0: i32) -> (i32, i32, i32) {
    %c0_i32 = arith.constant 0 : i32
    %c0_i32_0 = arith.constant 0 : i32
    %c0_i32_1 = arith.constant 0 : i32
    return %arg0, %c0_i32, %c0_i32_0 : i32, i32, i32
  }
  func.func @transform_16(%arg0: i32) -> (i32, i32, i32) {
    %c0_i32 = arith.constant 0 : i32
    %c0_i32_0 = arith.constant 0 : i32
    %c0_i32_1 = arith.constant 0 : i32
    return %arg0, %c0_i32, %c0_i32_0 : i32, i32, i32
  }
  func.func @transform_17(%arg0: i32) -> (i32, i32, i32) {
    %c0_i32 = arith.constant 0 : i32
    %c0_i32_0 = arith.constant 0 : i32
    %c0_i32_1 = arith.constant 0 : i32
    return %arg0, %c0_i32, %c0_i32_0 : i32, i32, i32
  }
  func.func @transform_18(%arg0: i32) -> (i32, i32, i32) {
    %c0_i32 = arith.constant 0 : i32
    %c0_i32_0 = arith.constant 0 : i32
    %c0_i32_1 = arith.constant 0 : i32
    return %arg0, %c0_i32, %c0_i32_0 : i32, i32, i32
  }
  func.func @transform_19(%arg0: i32) -> (i32, i32, i32) {
    %c0_i32 = arith.constant 0 : i32
    %c0_i32_0 = arith.constant 0 : i32
    %c0_i32_1 = arith.constant 0 : i32
    return %arg0, %c0_i32, %c0_i32_0 : i32, i32, i32
  }
}

</mosaic_0001>

<bundles_post_ra>
// kernel: my_model_fwd.1
= control target key start
LH: loop header
LB: loop body
LE: loop exit
PB: predicated region body
PF: predicated region fallthrough
CT: control target
= control target key end

     0   :  { %s3724_s0 = inlined_call_operand.vmem [shape: f32[8,16], index: 0, kind: input, shape index: {}]   ;;  %s3725_s1 = inlined_call_operand.vmem [shape: f32[16,32], index: 1, kind: input, shape index: {}]   ;;  %s3726_s2 = inlined_call_operand.hbm [shape: f32[1,32], index: 2, kind: input, shape index: {}]   ;;  %s3727_s3 = inlined_call_operand.hbm [shape: f32[8,8], index: 3, kind: input, shape index: {}]   ;;  %s3728_s4 = inlined_call_operand.hbm [shape: f32[32,32], index: 4, kind: input, shape index: {}]   ;;  %s3729_s5 = inlined_call_operand.vmem [shape: f32[2,32,192], index: 5, kind: input, shape index: {}]   ;;  %s3730_s6 = inlined_call_operand.hbm [shape: f32[2,1,192], index: 6, kind: input, shape index: {}]   ;;  %s3731_s7 = inlined_call_operand.vmem [shape: f32[2,64,32], index: 7, kind: input, shape index: {}]   ;;  %s3732_s8 = inlined_call_operand.vmem [shape: f32[2,1,32], index: 8, kind: input, shape index: {}]   ;;  %s3733_s9 = inlined_call_operand.hbm [shape: f32[2,8,48], index: 9, kind: input, shape index: {}]   ;;  %s3734_s10 = inlined_call_operand.hbm [shape: f32[2,1,48], index: 10, kind: input, shape index: {}]   ;;  %s3735_s11 = inlined_call_operand.vmem [shape: f32[2,16,8], index: 11, kind: input, shape index: {}]   ;;  %s3736_s12 = inlined_call_operand.hbm [shape: f32[2,1,8], index: 12, kind: input, shape index: {}]   ;;  %s3737_s13 = inlined_call_operand.vmem [shape: f32[2,32,32], index: 13, kind: input, shape index: {}]   ;;  %s3738_s14 = inlined_call_operand.hbm [shape: f32[2,1,32], index: 14, kind: input, shape index: {}]   ;;  %s3739_s15 = inlined_call_operand.vmem [shape: f32[2,32,16], index: 15, kind: input, shape index: {}]   ;;  %s3740_s16 = inlined_call_operand.hbm [shape: f32[2,1,16], index: 16, kind: input, shape index: {}]   ;;  %s3741_s17 = inlined_call_operand.vmem [shape: f32[2,16,16], index: 17, kind: input, shape index: {}]   ;;  %s3742_s18 = inlined_call_operand.hbm [shape: f32[2,1,16], index: 18, kind: input, shape index: {}]   ;;  %s3743_s19 = inlined_call_operand.vmem [shape: f32[2,8,16], index: 19, kind: output, shape index: {}]  }
   0x1   :  { %3751 = sst [smem:[#allocation34_spill]] %s3724_s0 }
   0x2   :  { %3752 = sst [smem:[#allocation35_spill]] %s3725_s1 }
   0x3   :  { %3753 = sst [smem:[#allocation36_spill]] %s3726_s2 }
   0x4   :  { %3754 = sst [smem:[#allocation37_spill]] %s3727_s3 }
   0x5   :  { %3755 = sst [smem:[#allocation38_spill]] %s3729_s5 }
   0x6   :  { %3756 = sst [smem:[#allocation39_spill]] %s3730_s6 }
   0x7   :  { %3757 = sst [smem:[#allocation40_spill]] %s3731_s7 }
   0x8   :  { %3758 = sst [smem:[#allocation41_spill]] %s3732_s8 }
   0x9   :  { %3759 = sst [smem:[#allocation42_spill]] %s3734_s10 }
   0xa   :  { %3760 = sst [smem:[#allocation43_spill]] %s3735_s11 }
   0xb   :  { %3761 = sst [smem:[#allocation44_spill]] %s3737_s13 }
   0xc   :  { %3762 = sst [smem:[#allocation45_spill]] %s3739_s15 }
   0xd   :  { %3763 = sst [smem:[#allocation46_spill]] %s3741_s17 }
   0xe   :  { %3764 = sst [smem:[#allocation47_spill]] %s3743_s19 }
   0xf   :  { %24 = vsyncpa [#allocation10], 0 }
  0x10   :  { %25 = vsyncpa [#allocation12], 0 }
  0x11   :  { %26 = vsyncpa [#allocation15], 0 }
  0x12   :  { %28 = vsyncpa [#allocation15 + $0x1], 0 }
  0x13   :  { %29 = vsyncpa [#allocation18], 0 }
  0x14   :  { %31 = vsyncpa [#allocation18 + $0x1], 0 }
  0x15   :  { %32 = vsyncpa [#allocation21], 0 }
  0x16   :  { %34 = vsyncpa [#allocation21 + $0x1], 0 }
  0x17   :  { %35 = vsyncpa [#allocation24], 0 }
  0x18   :  { %37 = vsyncpa [#allocation24 + $0x1], 0  ;;  %s3163_s0 = smov 0   ;;  %s3165_s30 = smov 0  }
  0x19   :  { %s3167_s20 = smov 0   ;;  %s3169_s21 = smov 0  }
  0x1a LB: > { %3765 = sst [smem:[#allocation31_spill]] %s3041_s20  ;;  %s3182_s1 = sadd.s32 4294967295, %s3045_s21   ;;  %s3045_s21 = sphi %s3169_s21, %s3791_s21   ;;  %s3041_s20 = sphi %s3167_s20, %s3793_s20   ;;  %s3037_s30 = sphi %s3165_s30, %s3795_s30   ;;  %s3033_s0 = sphi %s3163_s0, %s3794_s0  }
  0x1b   : > { %s3185_s22 = sadd.s32 1, %s3045_s21   ;;  %s181_s23 = sadd.s32 1, %s3041_s20 }
  0x1c   : > { %3766 = sst [smem:[#allocation32_spill]] %s3185_s22  ;;  %s178_s2 = ssub.s32 %s3045_s21, %s3185_s22 }
  0x1d   : > { %p179_p0 = scmp.eq.s32.totalorder %s178_s2, 0  ;;  %p188_p1 = scmp.ne.s32.totalorder %s3041_s20, %s3037_s30 }
  0x1e   : > { %p189_p2 = scmp.eq.s32.totalorder %s3045_s21, 0  ;;  %p194_p3 = scmp.ne.s32.totalorder %s3037_s30, %s3033_s0 }
  0x1f   : > { %s3195_s24 = scalar_select %p179_p0, %s3041_s20, %s181_s23  }
  0x20   : > { %p3197_p4 = por %p189_p2, %p188_p1  ;;  %p195_p5 = scmp.eq.s32.totalorder %s3182_s1, 0 }
  0x21   : > { %3767 = sst [smem:[#allocation33_spill]] %s3195_s24  ;;  %p2420_p6 = scmp.ge.s32.totalorder %s3045_s21, 1 }
  0x22   : > { %p543_p7 = scmp.lt.s32.totalorder %s3045_s21, 3  ;;  %p3206_p8 = por %p195_p5, %p194_p3 }
  0x23   : > { %s3771_s29 = sld [smem:[#allocation37_spill]]  ;;  %s3047_s2 = smov [#allocation11]  }
  0x24   : > { %p3210_p9 = pnand %p2420_p6, %p543_p7  ;;  %s575_s23 = sshll.u32 %s3047_s2, 4  ;;  %s576_s23 = int_to_ptr.vmem [resolvable:$true] %s575_s23 }
  0x25   : > { %p2562_p12 = scmp.lt.s32.totalorder %s3045_s21, 2  ;;  %s3227_s22 = sand.u32 1, %s3045_s21  }
  0x26   : > { %p2527_p10 = pneg %p3210_p9  ;;  %s3230_s19 = sand.u32 1, %s3041_s20  }
  0x27   : > { %p3234_p13 = pnand %p2562_p12, %p3197_p4  ;;  %s2425_s28 = sshll.u32 %s3230_s19, 1 }
  0x28   : > { %p3221_p11 = pnand %p2527_p10, %p195_p5  ;;  %s3774_s6 = sld [smem:[#allocation39_spill]] }
  0x29   : > { %s573_s0 = sshll.u32 %s3771_s29, 4  ;;  %s2426_s29 = sshll.u32 %s3045_s21, 1  ;;  %s574_s0 = int_to_ptr.hbm [resolvable:$true] %s573_s0 }
  0x2a   : > { %2533 = dma.hbm_to_vmem [thread:$0]  (!%p3221_p11), %s574_s0, 128, %s576_s23, [#allocation12]  }
  0x2b   : > { %s612_s11 = scalar_lea.vmem [#allocation14], %s2425_s28  ;;  %s3748_s25 = scalar_lea.sflag [#allocation15], %s3227_s22 }
  0x2c   : > { %s620_s8 = sshll.u32 %s612_s11, 4  ;;  %p3248_p1 = pneg %p3234_p13  ;;  %s621_s8 = int_to_ptr.vmem [resolvable:$true] %s620_s8 }
  0x2e   : > { %s616_s15 = scalar_lea.hbm %s3774_s6, %s2426_s29  ;;  %s2728_s11 = scalar_lea.hbm %s3774_s6, 4 }
  0x2f   : > { %s618_s13 = sshll.u32 %s616_s15, 4  ;;  %s619_s13 = int_to_ptr.hbm [resolvable:$true] %s618_s13 }
  0x30   : > { %s2721_s20 = sshra.s32 %s619_s13, 4  ;;  %s2722_s20 = int_to_ptr.hbm [resolvable:$true] %s2721_s20 }
  0x31   : > { %s2723_s7 = scalar_lea.hbm %s2722_s20, 2  ;;  %p2729_p4 = scmp.lt.s32.totalorder %s2722_s20, %s3774_s6 }
  0x32   : > { %p2724_p0 = scmp.ne.s32.totalorder %s2722_s20, %s2723_s7  ;;  %p2730_p6 = scmp.lt.s32.totalorder %s2728_s11, %s2723_s7 }
  0x34   : > { %p2726_p2 = pnand %p3248_p1, %p2724_p0  ;;  %p2731_p7 = por %p2730_p6, %p2729_p4 }
  0x36   : > { %p2727_p3 = pneg %p2726_p2 }
  0x38   : > { %p2732_p10 = pnand %p2731_p7, %p2727_p3 }
  0x3a   : > { %2735 = shalt.err (!%p2732_p10)
}
  0x3b   : > { %2540 = dma.hbm_to_vmem [thread:$0]  (!%p3234_p13), %s619_s13, 32, %s621_s8, %s3748_s25  }
  0x3c   : > { %s3776_s10 = sld [smem:[#allocation42_spill]]  ;;  %s663_s17 = scalar_lea.vmem [#allocation17], %s3230_s19 }
  0x3d   : > { %s670_s15 = sshll.u32 %s663_s17, 4  ;;  %s3749_s7 = scalar_lea.sflag [#allocation18], %s3227_s22  ;;  %s671_s15 = int_to_ptr.vmem [resolvable:$true] %s670_s15 }
  0x42   : > { %s666_s2 = scalar_lea.hbm %s3776_s10, %s3045_s21  ;;  %s2758_s8 = scalar_lea.hbm %s3776_s10, 2 }
  0x43   : > { %s668_s20 = sshll.u32 %s666_s2, 4  ;;  %s669_s20 = int_to_ptr.hbm [resolvable:$true] %s668_s20 }
  0x44   : > { %s2751_s11 = sshra.s32 %s669_s20, 4  ;;  %s2752_s11 = int_to_ptr.hbm [resolvable:$true] %s2751_s11 }
  0x45   : > { %s2753_s0 = scalar_lea.hbm %s2752_s11, 1  ;;  %p2759_p3 = scmp.lt.s32.totalorder %s2752_s11, %s3776_s10 }
  0x46   : > { %p2754_p12 = scmp.ne.s32.totalorder %s2752_s11, %s2753_s0  ;;  %p2760_p4 = scmp.lt.s32.totalorder %s2758_s8, %s2753_s0 }
  0x48   : > { %p2756_p0 = pnand %p2754_p12, %p3248_p1  ;;  %p2761_p6 = por %p2760_p4, %p2759_p3 }
  0x4a   : > { %p2757_p2 = pneg %p2756_p0 }
  0x4c   : > { %p2762_p7 = pnand %p2761_p6, %p2757_p2 }
  0x4e   : > { %2765 = shalt.err (!%p2762_p7)
}
  0x4f   : > { %2546 = dma.hbm_to_vmem [thread:$0]  (!%p3234_p13), %s669_s20, 16, %s671_s15, %s3749_s7  }
  0x50   : > { %s716_s2 = scalar_lea.hbm %s3738_s14, %s3045_s21  ;;  %s713_s23 = scalar_lea.vmem [#allocation20], %s3230_s19 }
  0x51   : > { %s718_s17 = sshll.u32 %s716_s2, 4  ;;  %s720_s11 = sshll.u32 %s713_s23, 4  ;;  %s719_s17 = int_to_ptr.hbm [resolvable:$true] %s718_s17  ;;  %s721_s11 = int_to_ptr.vmem [resolvable:$true] %s720_s11 }
  0x52   : > { %s3750_s0 = scalar_lea.sflag [#allocation21], %s3227_s22  ;;  %s2781_s8 = sshra.s32 %s719_s17, 4  ;;  %s2782_s8 = int_to_ptr.hbm [resolvable:$true] %s2781_s8 }
  0x53   : > { %s2783_s13 = scalar_lea.hbm %s2782_s8, 1  ;;  %s2788_s15 = scalar_lea.hbm %s3738_s14, 2 }
  0x54   : > { %p2784_p10 = scmp.ne.s32.totalorder %s2782_s8, %s2783_s13  ;;  %p2789_p2 = scmp.lt.s32.totalorder %s2782_s8, %s3738_s14 }
  0x55   : > { %p2790_p3 = scmp.lt.s32.totalorder %s2788_s15, %s2783_s13 }
  0x56   : > { %p2786_p12 = pnand %p2784_p10, %p3248_p1 }
  0x57   : > { %p2791_p4 = por %p2790_p3, %p2789_p2 }
  0x58   : > { %p2787_p0 = pneg %p2786_p12 }
  0x5a   : > { %p2792_p6 = pnand %p2791_p4, %p2787_p0 }
  0x5c   : > { %2795 = shalt.err (!%p2792_p6)
}
  0x5d   : > { %2552 = dma.hbm_to_vmem [thread:$0]  (!%p3234_p13), %s719_s17, 16, %s721_s11, %s3750_s0  }
  0x5e   : > { %s3777_s25 = sld [smem:[#allocation36_spill]]  ;;  %s3048_s28 = smov [#allocation9]  }
  0x5f   : > { %s563_s8 = sshll.u32 %s3048_s28, 4  ;;  %s584_s20 = sshll.u32 %s3728_s4, 4  ;;  %s564_s8 = int_to_ptr.vmem [resolvable:$true] %s563_s8  ;;  %s585_s20 = int_to_ptr.hbm [resolvable:$true] %s584_s20 }
  0x60   : > { %s3049_s29 = smov [#allocation13]   ;;  %s3050_s17 = smov 128  }
  0x61   : > { %s586_s7 = sshll.u32 %s3049_s29, 4  ;;  %s3051_s11 = smov 8   ;;  %s587_s7 = int_to_ptr.vmem [resolvable:$true] %s586_s7 }
  0x62   : > { %2536 = dma.hbm_to_vmem [thread:$0]  (!%p3221_p11), %s585_s20, 512, %s587_s7, [#allocation12], %s3050_s17, %s3050_s17, %s3051_s11  }
  0x63   : > { %s2427_s6 = sshll.u32 %s3230_s19, 3  ;;  %s2428_s2 = sshll.u32 %s3045_s21, 3 }
  0x64   : > { %s561_s23 = sshll.u32 %s3777_s25, 4  ;;  %s649_s0 = scalar_lea.hbm %s3733_s9, %s2428_s2  ;;  %s562_s23 = int_to_ptr.hbm [resolvable:$true] %s561_s23 }
  0x65   : > { %2530 = dma.hbm_to_vmem [thread:$0]  (!%p3221_p11), %s562_s23, 16, %s564_s8, [#allocation10]  }
  0x66   : > { %s651_s10 = sshll.u32 %s649_s0, 4  ;;  %s645_s13 = scalar_lea.vmem [#allocation16], %s2427_s6  ;;  %s652_s10 = int_to_ptr.hbm [resolvable:$true] %s651_s10 }
  0x67   : > { %s653_s15 = sshll.u32 %s645_s13, 4  ;;  %s2871_s23 = sshra.s32 %s652_s10, 4  ;;  %s654_s15 = int_to_ptr.vmem [resolvable:$true] %s653_s15  ;;  %s2872_s23 = int_to_ptr.hbm [resolvable:$true] %s2871_s23 }
  0x68   : > { %s2873_s8 = scalar_lea.hbm %s2872_s23, 8  ;;  %s2878_s20 = scalar_lea.hbm %s3733_s9, 16 }
  0x69   : > { %p2874_p7 = scmp.ne.s32.totalorder %s2872_s23, %s2873_s8  ;;  %p2879_p11 = scmp.lt.s32.totalorder %s2872_s23, %s3733_s9 }
  0x6a   : > { %p2880_p0 = scmp.lt.s32.totalorder %s2878_s20, %s2873_s8 }
  0x6b   : > { %p2876_p10 = pnand %p2874_p7, %p3248_p1 }
  0x6c   : > { %p2881_p2 = por %p2880_p0, %p2879_p11 }
  0x6d   : > { %p2877_p12 = pneg %p2876_p10 }
  0x6f   : > { %p2882_p3 = pnand %p2881_p2, %p2877_p12 }
  0x71   : > { %2885 = shalt.err (!%p2882_p3)
}
  0x72   : > { %s3778_s0 = scalar_lea.sflag [#allocation15], %s3227_s22  ;;  %s691_s2 = scalar_lea.hbm %s3736_s12, %s3045_s21 }
  0x73   : > { %2543 = dma.hbm_to_vmem [thread:$0]  (!%p3234_p13), %s652_s10, 128, %s654_s15, %s3778_s0  }
  0x74   : > { %s693_s25 = sshll.u32 %s691_s2, 4  ;;  %s688_s28 = scalar_lea.vmem [#allocation19], %s3230_s19  ;;  %s694_s25 = int_to_ptr.hbm [resolvable:$true] %s693_s25 }
  0x75   : > { %s695_s13 = sshll.u32 %s688_s28, 4  ;;  %s2901_s23 = sshra.s32 %s694_s25, 4  ;;  %s696_s13 = int_to_ptr.vmem [resolvable:$true] %s695_s13  ;;  %s2902_s23 = int_to_ptr.hbm [resolvable:$true] %s2901_s23 }
  0x76   : > { %s2903_s8 = scalar_lea.hbm %s2902_s23, 1  ;;  %s2908_s10 = scalar_lea.hbm %s3736_s12, 2 }
  0x77   : > { %p2904_p4 = scmp.ne.s32.totalorder %s2902_s23, %s2903_s8  ;;  %p2909_p10 = scmp.lt.s32.totalorder %s2902_s23, %s3736_s12 }
  0x78   : > { %p2910_p12 = scmp.lt.s32.totalorder %s2908_s10, %s2903_s8 }
  0x79   : > { %p2906_p6 = pnand %p2904_p4, %p3248_p1 }
  0x7a   : > { %p2911_p11 = por %p2910_p12, %p2909_p10 }
  0x7b   : > { %p2907_p7 = pneg %p2906_p6 }
  0x7d   : > { %p2912_p0 = pnand %p2911_p11, %p2907_p7 }
  0x7f   : > { %2915 = shalt.err (!%p2912_p0)
}
  0x80   : > { %s3779_s29 = scalar_lea.sflag [#allocation18], %s3227_s22  ;;  %s741_s11 = scalar_lea.hbm %s3740_s16, %s3045_s21 }
  0x81   : > { %2549 = dma.hbm_to_vmem [thread:$0]  (!%p3234_p13), %s694_s25, 16, %s696_s13, %s3779_s29  }
  0x82   : > { %s743_s6 = sshll.u32 %s741_s11, 4  ;;  %s738_s2 = scalar_lea.vmem [#allocation22], %s3230_s19  ;;  %s744_s6 = int_to_ptr.hbm [resolvable:$true] %s743_s6 }
  0x83   : > { %s745_s28 = sshll.u32 %s738_s2, 4  ;;  %s2931_s23 = sshra.s32 %s744_s6, 4  ;;  %s746_s28 = int_to_ptr.vmem [resolvable:$true] %s745_s28  ;;  %s2932_s23 = int_to_ptr.hbm [resolvable:$true] %s2931_s23 }
  0x84   : > { %s2933_s8 = scalar_lea.hbm %s2932_s23, 1  ;;  %s2938_s25 = scalar_lea.hbm %s3740_s16, 2 }
  0x85   : > { %p2934_p2 = scmp.ne.s32.totalorder %s2932_s23, %s2933_s8  ;;  %p2939_p6 = scmp.lt.s32.totalorder %s2932_s23, %s3740_s16 }
  0x86   : > { %p2940_p7 = scmp.lt.s32.totalorder %s2938_s25, %s2933_s8 }
  0x87   : > { %p2936_p3 = pnand %p2934_p2, %p3248_p1 }
  0x88   : > { %p2941_p10 = por %p2940_p7, %p2939_p6 }
  0x89   : > { %p2937_p4 = pneg %p2936_p3 }
  0x8b   : > { %p2942_p12 = pnand %p2941_p10, %p2937_p4 }
  0x8d   : > { %2945 = shalt.err (!%p2942_p12)
}
  0x8e   : > { %s3780_s15 = scalar_lea.sflag [#allocation21], %s3227_s22  ;;  %s766_s17 = scalar_lea.hbm %s3742_s18, %s3045_s21 }
  0x8f   : > { %2555 = dma.hbm_to_vmem [thread:$0]  (!%p3234_p13), %s744_s6, 16, %s746_s28, %s3780_s15  }
  0x90   : > { %s763_s0 = scalar_lea.vmem [#allocation23], %s3230_s19  ;;  %s768_s2 = sshll.u32 %s766_s17, 4  ;;  %s769_s2 = int_to_ptr.hbm [resolvable:$true] %s768_s2 }
  0x91   : > { %s770_s11 = sshll.u32 %s763_s0, 4  ;;  %s761_s23 = scalar_lea.sflag [#allocation24], %s3230_s19  ;;  %s771_s11 = int_to_ptr.vmem [resolvable:$true] %s770_s11 }
  0x92   : > { %s2961_s8 = sshra.s32 %s769_s2, 4  ;;  %s2968_s6 = scalar_lea.hbm %s3742_s18, 2  ;;  %s2962_s8 = int_to_ptr.hbm [resolvable:$true] %s2961_s8 }
  0x93   : > { %s2963_s24 = scalar_lea.hbm %s2962_s8, 1  ;;  %p2969_p3 = scmp.lt.s32.totalorder %s2962_s8, %s3742_s18 }
  0x94   : > { %p2964_p11 = scmp.ne.s32.totalorder %s2962_s8, %s2963_s24  ;;  %p2970_p4 = scmp.lt.s32.totalorder %s2968_s6, %s2963_s24 }
  0x96   : > { %p2966_p0 = pnand %p2964_p11, %p3248_p1  ;;  %p2971_p6 = por %p2970_p4, %p2969_p3 }
  0x98   : > { %p2967_p2 = pneg %p2966_p0 }
  0x9a   : > { %p2972_p7 = pnand %p2971_p6, %p2967_p2 }
  0x9c   : > { %2975 = shalt.err (!%p2972_p7)
}
  0x9d   : > { %2558 = dma.hbm_to_vmem [thread:$0]  (!%p3234_p13), %s769_s2, 16, %s771_s11, %s761_s23  }
  0x9e   : > { %779 = sbr.rel (%p3210_p9) target bundleno = 3695 (0xe6f), region = 96 }
  0xa3   : > { %3008 = dma.done.wait (%p195_p5), [#allocation10], 16  }
  0xa4   : > { %3010 = vsyncadd (%p195_p5), [#allocation10], 4294967280 }
  0xa5   : > { %3012 = dma.done.wait (%p195_p5), [#allocation12], 640  }
  0xa6   : > { %3014 = vsyncadd (%p195_p5), [#allocation12], 4294966656  ;;  %s796_s5 = sand.u32 1, %s3182_s1   ;;  %s3389_s19 = sand.u32 1, %s3037_s30  }
  0xa7   : > { %s2433_s21 = sshll.u32 %s3389_s19, 1  ;;  %s797_s26 = scalar_lea.sflag [#allocation15], %s796_s5 }
  0xa8   : > { %s3392_s27 = scalar_lea.vmem [#allocation14], %s2433_s21 }
  0xa9   : > { %3016 = dma.done.wait (%p3206_p8), %s797_s26, 160  }
  0xaa   : > { %3018 = vsyncadd (%p3206_p8), %s797_s26, 4294967136  ;;  %s2434_s13 = sshll.u32 %s3389_s19, 3  ;;  %s817_s15 = scalar_lea.sflag [#allocation18], %s796_s5 }
  0xab   : > { %s3399_s10 = scalar_lea.vmem [#allocation16], %s2434_s13  ;;  %s819_s20 = scalar_lea.vmem [#allocation17], %s3389_s19 }
  0xac   : > { %3020 = dma.done.wait (%p3206_p8), %s817_s15, 32  }
  0xad   : > { %3022 = vsyncadd (%p3206_p8), %s817_s15, 4294967264  ;;  %s828_s29 = scalar_lea.vmem [#allocation19], %s3389_s19  ;;  %s835_s17 = scalar_lea.sflag [#allocation21], %s796_s5 }
  0xae   : > { %s837_s0 = scalar_lea.vmem [#allocation20], %s3389_s19 }
  0xaf   : > { %3024 = dma.done.wait (%p3206_p8), %s835_s17, 32  }
  0xb0   : > { %3026 = vsyncadd (%p3206_p8), %s835_s17, 4294967264  ;;  %s846_s11 = scalar_lea.vmem [#allocation22], %s3389_s19  ;;  %s853_s2 = scalar_lea.sflag [#allocation24], %s3389_s19 }
  0xb1   : > { %s855_s23 = scalar_lea.vmem [#allocation23], %s3389_s19 }
  0xb2   : > { %3028 = dma.done.wait (%p3206_p8), %s853_s2, 16  }
  0xb3   : > { %3030 = vsyncadd (%p3206_p8), %s853_s2, 4294967280  ;;  %p968_p5 = scmp.lt.s32.totalorder %s3182_s1, 1  ;;  %s3781_s7 = sld [smem:[#allocation38_spill]]  ;;  %vm1012_vm0 = vcmask 130048   ;;  %v2634_v11 = vld [vmem:[#allocation9] ss:$0 sm:$0xff] }
  0xb4   : > { %s3782_s5 = sld [smem:[#allocation35_spill]]  ;;  %vm1050_vm1 = vcmask 261120   ;;  %v1044_v14 = vld [vmem:[%s3392_s27] sm:$0x3]  ;;  %s3052_s17 = smov 96   ;;  %vm1095_vm2 = vcmask 523264  }
  0xb5   : > { %s3797_s1 = smov (!%p968_p5, %s3182_s1), 1  ;;  %s3783_s15 = sld [smem:[#allocation34_spill]]  ;;  %v1046_v15 = vperm.slane %v1044_v14, 0  ;;  %v1047_v18 = vperm.slane %v1044_v14, 1  ;;  %v1097_v27 = vld [vmem:[#allocation11] sm:$0xff]  ;;  %vm1129_vm3 = vcmask 64512  }
  0xb6   : > { %s2495_s8 = sshll.u32 %s3797_s1, 6  ;;  %s3053_s2 = smov 64   ;;  %vm1266_vm12 = vcmask 523520  }
  0xb7   : > { %s3054_s24 = smov 32   ;;  %s3785_s21 = sld [smem:[#allocation41_spill]] }
  0xb8   : > { %s3058_s26 = smov 112   ;;  %s3060_s13 = smov 8  }
  0xb9   : > { %s972_s6 = scalar_lea.vmem %s3781_s7, %s2495_s8  ;;  %s3784_s7 = sld [smem:[#allocation40_spill]] }
  0xba   : > { %v1007_v0 = vld [vmem:[%s3782_s5 + $0x8] sm:$0xff]  ;;  %v1006_v1 = vld [vmem:[%s3782_s5] sm:$0xff]  ;;  %v1043_v3 = vld [vmem:[%s972_s6 + $0x38] sm:$0xff]  ;;  %s2498_s22 = sshll.u32 %s3797_s1, 5  ;;  %s3787_s28 = sld [smem:[#allocation44_spill]] }
  0xbb   : > { %1030 = vmatpush.msra.mxu0 %v1007_v0  ;;  %v1005_v2 = vld [vmem:[%s3783_s15] sm:$0xff]  ;;  %v1042_v4 = vld [vmem:[%s972_s6 + $0x30] sm:$0xff]  ;;  %1086 = vmatpush.msra.mxu2 %v1043_v3  ;;  %v1041_v5 = vld [vmem:[%s972_s6 + $0x28] sm:$0xff]  ;;  %s2497_s15 = sshll.u32 %s3797_s1, 4 }
  0xbc   : > { %v1040_v6 = vld [vmem:[%s972_s6 + $0x20] sm:$0xff]  ;;  %v1038_v7 = vld [vmem:[%s972_s6 + $0x10] sm:$0xff]  ;;  %v1039_v8 = vld [vmem:[%s972_s6 + $0x18] sm:$0xff] }
  0xbd   : > { %1031 = vmatpush.msra.mxu0 %v1006_v1  ;;  %1087 = vmatpush.msra.mxu2 %v1041_v5  ;;  %v1036_v9 = vld [vmem:[%s972_s6] sm:$0xff]  ;;  %v1037_v10 = vld [vmem:[%s972_s6 + $0x8] sm:$0xff]  ;;  %s980_s3 = scalar_lea.vmem %s3785_s21, %s3797_s1  ;;  %s3062_s21 = smov 24  }
  0xbe   : > { %2448 = vmatmul.msk.f32.vlgmr.msra.gmra.mxu0 %vm1012_vm0, %v1005_v2 }
  0xbf   : > { %1066 = vmatpush.msrb.mxu0 %v1042_v4  ;;  %1088 = vmatpush.msra.mxu2 %v1039_v8  ;;  %s977_s6 = scalar_lea.vmem %s3784_s7, %s2495_s8  ;;  %s3057_s8 = smov 120  }
  0xc0   : > { %v1276_v5 = vld [vmem:[%s977_s6 + $0x38] sm:$0xff]  ;;  %v1273_v8 = vld [vmem:[%s977_s6 + $0x20] sm:$0xff]  ;;  %v1270_v14 = vld [vmem:[%s977_s6 + $0x8] sm:$0xff]  ;;  %s990_s25 = scalar_lea.vmem %s3787_s28, %s2498_s22 }
  0xc1   : > { %1067 = vmatpush.msrb.mxu0 %v1040_v6  ;;  %1089 = vmatpush.msra.mxu2 %v1037_v10  ;;  %v1275_v6 = vld [vmem:[%s977_s6 + $0x30] sm:$0xff] }
  0xc3   : > { %1068 = vmatpush.msrb.mxu0 %v1038_v7  ;;  %1292 = vmatpush.msrb.mxu2 %v1276_v5  ;;  %v1274_v7 = vld [vmem:[%s977_s6 + $0x28] sm:$0xff] }
  0xc5   : > { %1069 = vmatpush.msrb.mxu0 %v1036_v9  ;;  %1293 = vmatpush.msrb.mxu2 %v1275_v6 }
  0xc7   : > { %1294 = vmatpush.msrb.mxu2 %v1274_v7 }
  0xc9   : > { %1295 = vmatpush.msrb.mxu2 %v1273_v8 }
 0x13b   : > { %v1033_v12 = vpop.f32.mrf.mxu0 }
 0x13c   : > { %v3439_v13 = vadd.f32 %v2634_v11, %v1033_v12  ;;  %v1272_v11 = vld [vmem:[%s977_s6 + $0x18] sm:$0xff]  ;;  %v1271_v12 = vld [vmem:[%s977_s6 + $0x10] sm:$0xff] }
 0x13d   : > { %1296 = vmatpush.msrb.mxu2 %v1272_v11  ;;  %v1446_v11 = vld [vmem:[#allocation13] sm:$0xff] }
 0x13e   : > { %2449 = vmatmul.msk.f32.vlgmr.msrb.gmra.mxu0 %vm1050_vm1, %v3439_v13  ;;  %2450 = vmatmul.msk.f32.vlgmr.msra.gmra.mxu2 %vm1050_vm1, %v3439_v13 }
 0x13f   : > { %1297 = vmatpush.msrb.mxu2 %v1271_v12 }
 0x141   : > { %1298 = vmatpush.msrb.mxu2 %v1270_v14 }
 0x1bb   : > { %v1071_v16 = vpop.f32.mrf.mxu0 }
 0x1bc   : > { %v1072_v17 = vadd.f32 %v1071_v16, %v1046_v15  ;;  %v1269_v15 = vld [vmem:[%s977_s6] sm:$0xff] }
 0x1bd   : > { %1299 = vmatpush.msrb.mxu2 %v1269_v15 }
 0x1be   : > { %1181 = vrot.lane.b32.xlu1 %v1072_v17, %s3052_s17  ;;  %1101 = vrot.lane.b32.xlu0 %v1072_v17, %s3053_s2 }
 0x1c1   : > { %v1091_v19 = vpop.f32.mrf.mxu2 }
 0x1c2   : > { %v1092_v20 = vadd.f32 %v1091_v19, %v1047_v18  ;;  %v2635_v18 = vld [vmem:[%s980_s3] ss:$0 sm:$0xff] }
 0x1c4   : > { %1096 = vst.msk [vmem:[#allocation2 + $0x8] sm:$0xff] %vm1095_vm2, %v1092_v20 }
 0x1c6   : > { %1183 = vrot.lane.b32.xlu0 %v1072_v17, %s3054_s24 }
 0x1cb   : > { %v1099_v21 = vld [vmem:[#allocation2 + $0x8] sm:$0xff] }
 0x1cc   : > { %1172 = vmatpush.msra.mxu0 %v1099_v21 }
 0x1ce   : > { %1236 = vrot.lane.b32.xlu0 %v1099_v21, %s3052_s17 }
 0x230   : > { %v1102_v22 = vpop.permute.xlu0 %1101  ;;  %v1182_v24 = vpop.permute.xlu1 %1181 }
 0x231   : > { %2451 = vmatpush.xpose.msk.msra.mxu3 %vm1050_vm1, %v1102_v22 }
 0x234   : > { %2452 = vmatmul.msk.f32.vlgmr.msra.gmra.mxu3 %vm1050_vm1, %v1072_v17 }
 0x238   : > { %v1184_v23 = vpop.permute.xlu0 %1183 }
 0x239   : > { %2454 = vmatpush.xpose.msk.msrb.mxu3 %vm1050_vm1, %v1184_v23  ;;  %v3055_v23 = vmov 32.0  }
 0x23c   : > { %2455 = vmatmul.msk.f32.vlgmr.msrb.gmra.mxu3 %vm1050_vm1, %v1182_v24 }
 0x240   : > { %v1237_v25 = vpop.permute.xlu0 %1236 }
 0x241   : > { %1257 = vmatpush.msra.mxu1 %v1237_v25 }
 0x2b7   : > { %v1124_v26 = vpop.f32.mrf.mxu3 }
 0x2b8   : > { %v1127_v28 = vmul.f32 0.03125, %v1124_v26 }
 0x2ba   : > { %v1128_v29 = vadd.f32 %v1127_v28, %v1097_v27 }
 0x2bc   : > { %v1130_v30 = vsel %vm1129_vm3, %v1128_v29, -inf }
 0x2bd   : > { %1131 = vmax.xlane.f32.xlu2 %v1130_v30 }
 0x2bf   : > { %v1206_v31 = vpop.f32.mrf.mxu3 }
 0x2c0   : > { %v1209_v32 = vmul.f32 0.03125, %v1206_v31 }
 0x2c2   : > { %v1210_v33 = vadd.f32 %v1209_v32, %v1097_v27 }
 0x2c4   : > { %v1211_v34 = vsel %vm1129_vm3, %v1210_v33, -inf }
 0x2c5   : > { %1212 = vmax.xlane.f32.xlu1 %v1211_v34  ;;  %v1334_v34 = vld [vmem:[%s3399_s10] sm:$0xff]  ;;  %s3056_s10 = smov 104  }
 0x2c6   : > { %1358 = vmatpush.msrb.mxu0 %v1334_v34  ;;  %1413 = vmatpush.msrb.mxu1 %v1334_v34 }
 0x2c7   : > { %1386 = vmatpush.msra.mxu3 %v1334_v34 }
 0x330   : > { %v1132_v35 = vpop.xlane.xlu2 %1131 }
 0x331   : > { %v1133_v38 = vsub.f32 %v1128_v29, %v1132_v35 }
 0x333   : > { %v1134_v40 = vmul.f32 1.442695, %v1133_v38 }
 0x338   : > { %v1213_v36 = vpop.xlane.xlu1 %1212 }
 0x339   : > { %v1214_v37 = vsub.f32 %v1210_v33, %v1213_v36 }
 0x33b   : > { %v1215_v39 = vmul.f32 1.442695, %v1214_v37 }
 0x33d   : > { %2641 = vpow2.f32 %v1215_v39 }
 0x33e   : > { %2643 = vpow2.f32 %v1134_v40 }
 0x343   : > { %v2642_v41 = vpop.eup %2641 }
 0x344   : > { %v1217_v42 = vsel %vm1129_vm3, %v2642_v41, 0.0  ;;  %v2644_v43 = vpop.eup %2643 }
 0x345   : > { %1218 = vadd.xlane.f32.xlu2 %v1217_v42  ;;  %v1136_v44 = vsel %vm1129_vm3, %v2644_v43, 0.0 }
 0x34d   : > { %1137 = vadd.xlane.f32.xlu2 %v1136_v44 }
 0x3b8   : > { %v1219_v45 = vpop.xlane.xlu2 %1218 }
 0x3b9   : > { %2645 = vrcp.f32 %v1219_v45  ;;  %v1231_v50 = vand.u32 2147483648, %v1219_v45  ;;  %v1229_v52 = vand.u32 2147483647, %v1219_v45  ;;  %vm1225_vm5 = vweird.f32 %v1219_v45 }
 0x3bb   : > { %v1232_v55 = vor.u32 1.1754944e-38, %v1231_v50  ;;  %vm1230_vm7 = vcmp.eq.f32.partialorder %v1229_v52, 8.507059e+37 }
 0x3bf   : > { %v2646_v46 = vpop.eup %2645 }
 0x3c0   : > { %v1221_v47 = vmul.f32 %v2646_v46, %v1219_v45  ;;  %v1138_v48 = vpop.xlane.xlu2 %1137  ;;  %vm1226_vm4 = vweird.f32 %v2646_v46 }
 0x3c1   : > { %2647 = vrcp.f32 %v1138_v48  ;;  %vm1227_vm6 = vmor %vm1225_vm5, %vm1226_vm4  ;;  %v1150_v61 = vand.u32 2147483648, %v1138_v48  ;;  %v1148_v63 = vand.u32 2147483647, %v1138_v48  ;;  %vm1144_vm9 = vweird.f32 %v1138_v48 }
 0x3c2   : > { %v1222_v49 = vsub.f32 1.0, %v1221_v47  ;;  %2649 = vrcp.f32 %v3055_v23  ;;  %vm1363_vm4 = vcmask 392192  }
 0x3c3   : > { %v1151_v1 = vor.u32 1.1754944e-38, %v1150_v61  ;;  %vm1149_vm11 = vcmp.eq.f32.partialorder %v1148_v63, 8.507059e+37 }
 0x3c4   : > { %v1223_v51 = vmul.f32 %v2646_v46, %v1222_v49  ;;  %v2636_v49 = vld [vmem:[%s819_s20] ss:$0 sm:$0xff]  ;;  %s3059_s20 = smov 88  }
 0x3c6   : > { %v1224_v53 = vadd.f32 %v2646_v46, %v1223_v51 }
 0x3c7   : > { %v2648_v54 = vpop.eup %2647 }
 0x3c8   : > { %v1140_v56 = vmul.f32 %v2648_v54, %v1138_v48  ;;  %v1228_v57 = vsel %vm1227_vm6, %v2646_v46, %v1224_v53  ;;  %vm1145_vm8 = vweird.f32 %v2648_v54  ;;  %v2650_v24 = vpop.eup %2649 }
 0x3c9   : > { %v1233_v58 = vsel %vm1230_vm7, %v1232_v55, %v1228_v57  ;;  %vm1146_vm10 = vmor %vm1144_vm9, %vm1145_vm8  ;;  %v1309_v25 = vmul.f32 32.0, %v2650_v24  ;;  %vm1313_vm13 = vweird.f32 %v2650_v24 }
 0x3ca   : > { %v1141_v59 = vsub.f32 1.0, %v1140_v56  ;;  %v1234_v60 = vmul.f32 %v2642_v41, %v1233_v58 }
 0x3cb   : > { %v1310_v26 = vsub.f32 1.0, %v1309_v25 }
 0x3cc   : > { %v1142_v62 = vmul.f32 %v2648_v54, %v1141_v59  ;;  %2456 = vmatmul.msk.f32.vlgmr.msra.gmra.mxu1 %vm1129_vm3, %v1234_v60 }
 0x3cd   : > { %v1311_v27 = vmul.f32 %v2650_v24, %v1310_v26 }
 0x3ce   : > { %v1143_v0 = vadd.f32 %v2648_v54, %v1142_v62 }
 0x3cf   : > { %v1312_v28 = vadd.f32 %v2650_v24, %v1311_v27 }
 0x3d0   : > { %v1147_v2 = vsel %vm1146_vm10, %v2648_v54, %v1143_v0 }
 0x3d1   : > { %v1152_v3 = vsel %vm1149_vm11, %v1151_v1, %v1147_v2  ;;  %v3474_v29 = vsel %vm1313_vm13, %v2650_v24, %v1312_v28  ;;  %v1449_v28 = vld [vmem:[#allocation13 + $0x18] sm:$0xff] }
 0x3d2   : > { %v1153_v4 = vmul.f32 %v2644_v43, %v1152_v3 }
 0x3d4   : > { %2453 = vmatmul.msk.f32.vlgmr.msra.gmra.mxu0 %vm1129_vm3, %v1153_v4 }
 0x3d5   : > { %1440 = vmatpush.msra.mxu0 %v1334_v34 }
 0x449   : > { %v1259_v9 = vpop.f32.mrf.mxu1 }
 0x44a   : > { %1263 = vrot.lane.b32.xlu0 %v1259_v9, %s3054_s24  ;;  %s3786_s24 = sld [smem:[#allocation43_spill]] }
 0x450   : > { %s985_s27 = scalar_lea.vmem %s3786_s24, %s2497_s15 }
 0x451   : > { %v1174_v10 = vpop.f32.mrf.mxu0 }
 0x452   : > { %1177 = vst.msk [vmem:[#allocation3] sm:$0xff] %vm1050_vm1, %v1174_v10 }
 0x4bc   : > { %v1264_v16 = vpop.permute.xlu0 %1263 }
 0x4bd   : > { %1267 = vst.msk [vmem:[#allocation3] sm:$0xff] %vm1266_vm12, %v1264_v16 }
 0x4c4   : > { %v1268_v17 = vld [vmem:[#allocation3] sm:$0xff] }
 0x4c5   : > { %2457 = vmatmul.msk.f32.vlgmr.msrb.gmra.mxu2 %vm1095_vm2, %v1268_v17  ;;  %v1447_v17 = vld [vmem:[#allocation13 + $0x8] sm:$0xff] }
 0x548   : > { %v1301_v19 = vpop.f32.mrf.mxu2 }
 0x549   : > { %v1302_v20 = vadd.f32 %v2635_v18, %v1301_v19 }
 0x54b   : > { %v1304_v21 = vadd.f32 %v1302_v20, %v3439_v13 }
 0x54d   : > { %v1305_v22 = vsel %vm1050_vm1, %v1304_v21, 0.0 }
 0x54e   : > { %1306 = vadd.xlane.f32.xlu2 %v1305_v22 }
 0x5c1   : > { %v1307_v30 = vpop.xlane.xlu2 %1306 }
 0x5c2   : > { %v1315_v31 = vmul.f32 %v3474_v29, %v1307_v30 }
 0x5c4   : > { %v1316_v32 = vsub.f32 %v1304_v21, %v1315_v31 }
 0x5c6   : > { %v1317_v33 = vmul.f32 %v1316_v32, %v1316_v32 }
 0x5c8   : > { %v1318_v13 = vsel %vm1050_vm1, %v1317_v33, 0.0 }
 0x5c9   : > { %1319 = vadd.xlane.f32.xlu0 %v1318_v13 }
 0x63c   : > { %v1320_v35 = vpop.xlane.xlu0 %1319 }
 0x63d   : > { %v1321_v36 = vmul.f32 0.032258064, %v1320_v35 }
 0x63f   : > { %2651 = vrsqrt.f32 %v1321_v36  ;;  %vm1328_vm15 = vweird.f32 %v1321_v36 }
 0x645   : > { %v2652_v37 = vpop.eup %2651 }
 0x646   : > { %v1323_v38 = vmul.f32 %v2652_v37, %v1321_v36  ;;  %vm1329_vm14 = vweird.f32 %v2652_v37  ;;  %v1448_v36 = vld [vmem:[#allocation13 + $0x10] sm:$0xff] }
 0x647   : > { %vm1330_vm2 = vmor %vm1328_vm15, %vm1329_vm14 }
 0x648   : > { %v1324_v39 = vmul.f32 %v2652_v37, %v1323_v38 }
 0x64a   : > { %v1325_v40 = vmul.f32 0.5, %v1324_v39 }
 0x64c   : > { %v1326_v41 = vsub.f32 1.5, %v1325_v40 }
 0x64e   : > { %v1327_v42 = vmul.f32 %v2652_v37, %v1326_v41 }
 0x650   : > { %v1331_v43 = vsel %vm1330_vm2, %v2652_v37, %v1327_v42 }
 0x651   : > { %v3479_v44 = vmul.f32 %v1331_v43, %v1316_v32 }
 0x653   : > { %1333 = vst.msk [vmem:[#allocation4] sm:$0xff] %vm1050_vm1, %v3479_v44 }
 0x65a   : > { %v1419_v45 = vld [vmem:[#allocation4] sm:$0xff] }
 0x65b   : > { %1421 = vrot.lane.b32.xlu2 %v1419_v45, %s3056_s10  ;;  %1367 = vrot.lane.b32.xlu1 %v1419_v45, %s3057_s8 }
 0x65c   : > { %2458 = vmatmul.msk.f32.vlgmr.msrb.gmra.mxu0 %vm1129_vm3, %v1419_v45 }
 0x663   : > { %1394 = vrot.lane.b32.xlu2 %v1419_v45, %s3058_s26 }
 0x6b5   : > { %v1422_v46 = vpop.permute.xlu2 %1421 }
 0x6b6   : > { %2461 = vmatmul.msk.f32.vlgmr.msra.gmra.mxu0 %vm1129_vm3, %v1422_v46 }
 0x6bd   : > { %v1395_v47 = vpop.permute.xlu2 %1394 }
 0x6be   : > { %2460 = vmatmul.msk.f32.vlgmr.msrb.gmra.mxu1 %vm1129_vm3, %v1395_v47 }
 0x6cd   : > { %v1368_v48 = vpop.permute.xlu1 %1367 }
 0x6ce   : > { %2459 = vmatmul.msk.f32.vlgmr.msra.gmra.mxu3 %vm1129_vm3, %v1368_v48 }
 0x6d9   : > { %v1360_v50 = vpop.f32.mrf.mxu0 }
 0x6da   : > { %v1361_v51 = vadd.f32 %v2636_v49, %v1360_v50 }
 0x6dc   : > { %1364 = vst.msk [vmem:[#allocation5] sm:$0xff] %vm1363_vm4, %v1361_v51 }
 0x6e3   : > { %v3493_v52 = vld [vmem:[#allocation5] sm:$0xff] }
 0x6e4   : > { %1688 = vrot.lane.b32.xlu1 %v3493_v52, %s3056_s10 }
 0x733   : > { %v1442_v53 = vpop.f32.mrf.mxu0 }
 0x734   : > { %v1443_v54 = vadd.f32 %v2636_v49, %v1442_v53 }
 0x736   : > { %1445 = vst.msk [vmem:[#allocation5 + $0x18] sm:$0xff] %vm1363_vm4, %v1443_v54 }
 0x73b   : > { %v1415_v55 = vpop.f32.mrf.mxu1 }
 0x73c   : > { %v1416_v56 = vadd.f32 %v2636_v49, %v1415_v55 }
 0x73d   : > { %v3498_v57 = vld [vmem:[#allocation5 + $0x18] sm:$0xff] }
 0x73e   : > { %1418 = vst.msk [vmem:[#allocation5 + $0x10] sm:$0xff] %vm1363_vm4, %v1416_v56  ;;  %1694 = vrot.lane.b32.xlu2 %v3498_v57, %s3056_s10 }
 0x745   : > { %v3503_v58 = vld [vmem:[#allocation5 + $0x10] sm:$0xff] }
 0x746   : > { %1692 = vrot.lane.b32.xlu2 %v3503_v58, %s3056_s10  ;;  %v2614_v48 = vpack.i.bf16 %v3503_v58, %v3498_v57 }
 0x74e   : > { %1680 = vrot.lane.b32.xlu2 %v3493_v52, %s3057_s8 }
 0x751   : > { %v1388_v59 = vpop.f32.mrf.mxu3 }
 0x752   : > { %v1389_v60 = vadd.f32 %v2636_v49, %v1388_v59 }
 0x754   : > { %1391 = vst.msk [vmem:[#allocation5 + $0x8] sm:$0xff] %vm1363_vm4, %v1389_v60 }
 0x756   : > { %1684 = vrot.lane.b32.xlu2 %v3503_v58, %s3057_s8  ;;  %v1689_v0 = vpop.permute.xlu1 %1688 }
 0x75b   : > { %v3512_v61 = vld [vmem:[#allocation5 + $0x8] sm:$0xff] }
 0x75c   : > { %1690 = vrot.lane.b32.xlu0 %v3512_v61, %s3056_s10  ;;  %1682 = vrot.lane.b32.xlu1 %v3512_v61, %s3057_s8 }
 0x75e   : > { %1462 = vrot.lane.b32.xlu2 %v3503_v58, %s3058_s26 }
 0x764   : > { %1686 = vrot.lane.b32.xlu0 %v3498_v57, %s3057_s8  ;;  %1464 = vrot.lane.b32.xlu1 %v3498_v57, %s3058_s26  ;;  %s3788_s8 = sld [smem:[#allocation45_spill]] }
 0x76c   : > { %1460 = vrot.lane.b32.xlu1 %v3512_v61, %s3058_s26  ;;  %1458 = vrot.lane.b32.xlu0 %v3493_v52, %s3058_s26  ;;  %s995_s26 = scalar_lea.vmem %s3788_s8, %s2498_s22 }
 0x798   : > { %v1695_v62 = vpop.permute.xlu2 %1694 }
 0x799   : > { %2474 = vmatpush.xpose.msk.msra.mxu2 %vm1129_vm3, %v1695_v62 }
 0x7a0   : > { %v1693_v63 = vpop.permute.xlu2 %1692 }
 0x7a1   : > { %2475 = vmatpush.xpose.msk.msra.mxu2 %vm1129_vm3, %v1693_v63 }
 0x7a8   : > { %v1681_v1 = vpop.permute.xlu2 %1680 }
 0x7b0   : > { %v1685_v4 = vpop.permute.xlu2 %1684 }
 0x7b8   : > { %v1463_v7 = vpop.permute.xlu2 %1462 }
 0x7ce   : > { %v1691_v2 = vpop.permute.xlu0 %1690  ;;  %v1683_v3 = vpop.permute.xlu1 %1682 }
 0x7cf   : > { %2476 = vmatpush.xpose.msk.msra.mxu2 %vm1129_vm3, %v1691_v2 }
 0x7d3   : > { %2477 = vmatpush.xpose.msk.msra.mxu2 %vm1129_vm3, %v1689_v0 }
 0x7d6   : > { %2478 = vmatmul.msk.f32.vlgmr.msra.gmra.mxu2 %vm1129_vm3, %v1681_v1  ;;  %v1465_v5 = vpop.permute.xlu1 %1464  ;;  %v1687_v6 = vpop.permute.xlu0 %1686 }
 0x7d7   : > { %2462 = vmatpush.xpose.msk.msrb.mxu3 %vm1129_vm3, %v1465_v5 }
 0x7db   : > { %2463 = vmatpush.xpose.msk.msrb.mxu3 %vm1129_vm3, %v1463_v7 }
 0x7de   : > { %2479 = vmatmul.msk.f32.gmra.mxu2 %vm1129_vm3, %v1683_v3  ;;  %v1461_v8 = vpop.permute.xlu1 %1460  ;;  %v1459_v9 = vpop.permute.xlu0 %1458 }
 0x7df   : > { %2464 = vmatpush.xpose.msk.msrb.mxu3 %vm1129_vm3, %v1461_v8 }
 0x7e3   : > { %2465 = vmatpush.xpose.msk.msrb.mxu3 %vm1129_vm3, %v1459_v9 }
 0x7e6   : > { %2466 = vmatmul.msk.f32.vlgmr.msrb.gmra.mxu3 %vm1129_vm3, %v3493_v52  ;;  %2480 = vmatmul.msk.f32.gmra.mxu2 %vm1129_vm3, %v1685_v4  ;;  %v2619_v4 = vpack.i.bf16 %v3493_v52, %v3512_v61 }
 0x7ee   : > { %2467 = vmatmul.msk.f32.gmra.mxu3 %vm1129_vm3, %v3512_v61  ;;  %2481 = vmatmul.msk.f32.gmra.mxu2 %vm1129_vm3, %v1687_v6 }
 0x7f6   : > { %2468 = vmatmul.msk.f32.gmra.mxu3 %vm1129_vm3, %v3503_v58 }
 0x7fe   : > { %2469 = vmatmul.msk.f32.gmra.mxu3 %vm1129_vm3, %v3498_v57 }
 0x859   : > { %v1729_v10 = vpop.f32.mrf.mxu2 }
 0x85a   : > { %v1741_v12 = vmul.f32 0.17677669, %v1729_v10 }
 0x85c   : > { %v1745_v14 = vadd.f32 %v1741_v12, %v1446_v11 }
 0x85e   : > { %v1749_v15 = vsel %vm1050_vm1, %v1745_v14, -inf }
 0x85f   : > { %1750 = vmax.xlane.f32.xlu2 %v1749_v15 }
 0x861   : > { %v1732_v16 = vpop.f32.mrf.mxu2 }
 0x862   : > { %v1742_v18 = vmul.f32 0.17677669, %v1732_v16 }
 0x864   : > { %v1746_v19 = vadd.f32 %v1742_v18, %v1447_v17 }
 0x866   : > { %v1752_v20 = vsel %vm1050_vm1, %v1746_v19, -inf }
 0x867   : > { %1753 = vmax.xlane.f32.xlu1 %v1752_v20 }
 0x869   : > { %v1499_v21 = vpop.f32.mrf.mxu3  ;;  %v1735_v22 = vpop.f32.mrf.mxu2 }
 0x86a   : > { %v1511_v23 = vmul.f32 0.17677669, %v1499_v21  ;;  %v1743_v13 = vmul.f32 0.17677669, %v1735_v22 }
 0x86c   : > { %v1515_v24 = vadd.f32 %v1511_v23, %v1446_v11  ;;  %v1747_v39 = vadd.f32 %v1743_v13, %v1448_v36 }
 0x86e   : > { %v1519_v25 = vsel %vm1050_vm1, %v1515_v24, -inf  ;;  %v1755_v41 = vsel %vm1050_vm1, %v1747_v39, -inf }
 0x86f   : > { %1520 = vmax.xlane.f32.xlu1 %v1519_v25 }
 0x871   : > { %v1502_v26 = vpop.f32.mrf.mxu3  ;;  %v1738_v27 = vpop.f32.mrf.mxu2 }
 0x872   : > { %v1512_v30 = vmul.f32 0.17677669, %v1502_v26  ;;  %v1744_v31 = vmul.f32 0.17677669, %v1738_v27 }
 0x874   : > { %v3551_v32 = vadd.f32 %v1744_v31, %v1449_v28  ;;  %v1516_v33 = vadd.f32 %v1512_v30, %v1447_v17 }
 0x876   : > { %v1758_v34 = vsel %vm1050_vm1, %v3551_v32, -inf  ;;  %v1522_v35 = vsel %vm1050_vm1, %v1516_v33, -inf }
 0x877   : > { %1759 = vmax.xlane.f32.xlu2 %v1758_v34  ;;  %1523 = vmax.xlane.f32.xlu0 %v1522_v35 }
 0x879   : > { %v1505_v37 = vpop.f32.mrf.mxu3 }
 0x87a   : > { %v1513_v38 = vmul.f32 0.17677669, %v1505_v37 }
 0x87c   : > { %v1517_v40 = vadd.f32 %v1513_v38, %v1448_v36 }
 0x87e   : > { %v1525_v42 = vsel %vm1050_vm1, %v1517_v40, -inf }
 0x87f   : > { %1756 = vmax.xlane.f32.xlu0 %v1755_v41  ;;  %1526 = vmax.xlane.f32.xlu1 %v1525_v42 }
 0x881   : > { %v1508_v43 = vpop.f32.mrf.mxu3 }
 0x882   : > { %v1514_v45 = vmul.f32 0.17677669, %v1508_v43 }
 0x884   : > { %v3558_v46 = vadd.f32 %v1514_v45, %v1449_v28 }
 0x886   : > { %v1528_v47 = vsel %vm1050_vm1, %v3558_v46, -inf }
 0x887   : > { %1529 = vmax.xlane.f32.xlu2 %v1528_v47 }
 0x898   : > { %2615 = vrot.lane.b32.xlu1 %v2614_v48, %s3059_s20 }
 0x8d2   : > { %v1751_v49 = vpop.xlane.xlu2 %1750 }
 0x8d3   : > { %v1761_v50 = vsub.f32 %v1745_v14, %v1751_v49 }
 0x8d5   : > { %v1765_v51 = vmul.f32 1.442695, %v1761_v50 }
 0x8d7   : > { %2653 = vpow2.f32 %v1765_v51 }
 0x8da   : > { %v1754_v53 = vpop.xlane.xlu1 %1753 }
 0x8db   : > { %v1762_v60 = vsub.f32 %v1746_v19, %v1754_v53 }
 0x8dd   : > { %v3564_v54 = vpop.eup %2653  ;;  %v1767_v63 = vmul.f32 1.442695, %v1762_v60 }
 0x8de   : > { %v1773_v55 = vsel %vm1050_vm1, %v3564_v54, 0.0 }
 0x8df   : > { %1774 = vadd.xlane.f32.xlu2 %v1773_v55 }
 0x8e2   : > { %v1521_v56 = vpop.xlane.xlu1 %1520 }
 0x8e3   : > { %v1531_v59 = vsub.f32 %v1515_v24, %v1521_v56 }
 0x8e5   : > { %v1535_v62 = vmul.f32 1.442695, %v1531_v59 }
 0x8e7   : > { %2655 = vpow2.f32 %v1535_v62 }
 0x8e8   : > { %2657 = vpow2.f32 %v1767_v63 }
 0x8ea   : > { %v1524_v57 = vpop.xlane.xlu0 %1523  ;;  %v1760_v18 = vpop.xlane.xlu2 %1759 }
 0x8eb   : > { %v1532_v58 = vsub.f32 %v1516_v33, %v1524_v57  ;;  %v1764_v19 = vsub.f32 %v3551_v32, %v1760_v18 }
 0x8ed   : > { %v3568_v0 = vpop.eup %2655  ;;  %v1537_v1 = vmul.f32 1.442695, %v1532_v58  ;;  %v1771_v20 = vmul.f32 1.442695, %v1764_v19 }
 0x8ee   : > { %v1543_v2 = vsel %vm1050_vm1, %v3568_v0, 0.0  ;;  %v3572_v3 = vpop.eup %2657 }
 0x8ef   : > { %1544 = vadd.xlane.f32.xlu0 %v1543_v2  ;;  %2659 = vpow2.f32 %v1537_v1  ;;  %v1776_v6 = vsel %vm1050_vm1, %v3572_v3, 0.0 }
 0x8f2   : > { %v1527_v8 = vpop.xlane.xlu1 %1526  ;;  %v1757_v15 = vpop.xlane.xlu0 %1756 }
 0x8f3   : > { %v1533_v12 = vsub.f32 %v1517_v40, %v1527_v8  ;;  %v1763_v16 = vsub.f32 %v1747_v39, %v1757_v15 }
 0x8f5   : > { %v3576_v5 = vpop.eup %2659  ;;  %v1539_v52 = vmul.f32 1.442695, %v1533_v12  ;;  %v1769_v17 = vmul.f32 1.442695, %v1763_v16 }
 0x8f6   : > { %v1546_v7 = vsel %vm1050_vm1, %v3576_v5, 0.0 }
 0x8f7   : > { %1777 = vadd.xlane.f32.xlu0 %v1776_v6  ;;  %2620 = vrot.lane.b32.xlu2 %v2619_v4, %s3059_s20  ;;  %2661 = vpow2.f32 %v1539_v52 }
 0x8f8   : > { %1547 = vadd.xlane.f32.xlu1 %v1546_v7  ;;  %2663 = vpow2.f32 %v1769_v17 }
 0x8f9   : > { %2665 = vpow2.f32 %v1771_v20 }
 0x8fa   : > { %v1530_v25 = vpop.xlane.xlu2 %1529 }
 0x8fb   : > { %v1534_v42 = vsub.f32 %v3558_v46, %v1530_v25 }
 0x8fd   : > { %v3583_v61 = vpop.eup %2661  ;;  %v1541_v45 = vmul.f32 1.442695, %v1534_v42 }
 0x8fe   : > { %v1549_v14 = vsel %vm1050_vm1, %v3583_v61, 0.0  ;;  %v3588_v21 = vpop.eup %2663 }
 0x8ff   : > { %v1779_v22 = vsel %vm1050_vm1, %v3588_v21, 0.0  ;;  %v3592_v23 = vpop.eup %2665 }
 0x900   : > { %v1782_v24 = vsel %vm1050_vm1, %v3592_v23, 0.0 }
 0x90a   : > { %v2616_v9 = vpop.permute.xlu1 %2615 }
 0x90b   : > { %v2617_v10 = vunpack.i.l.bf16 %v2616_v9  ;;  %2625 = vrot.lane.b32.xlu0 %v2614_v48, %s3052_s17  ;;  %v2618_v11 = vunpack.i.h.bf16 %v2616_v9 }
 0x90d   : > { %1881 = vmatpush.msrb.mxu0 %v2617_v10 }
 0x90f   : > { %1882 = vmatpush.msrb.mxu0 %v2618_v11 }
 0x920   : > { %1550 = vadd.xlane.f32.xlu2 %v1549_v14 }
 0x935   : > { %1780 = vadd.xlane.f32.xlu0 %v1779_v22 }
 0x93d   : > { %1783 = vadd.xlane.f32.xlu0 %v1782_v24 }
 0x951   : > { %2630 = vrot.lane.b32.xlu0 %v2619_v4, %s3052_s17 }
 0x952   : > { %v1775_v26 = vpop.xlane.xlu2 %1774 }
 0x953   : > { %2667 = vrcp.f32 %v1775_v26  ;;  %v1796_v33 = vand.u32 2147483648, %v1775_v26  ;;  %v1794_v35 = vand.u32 2147483647, %v1775_v26  ;;  %vm1790_vm6 = vweird.f32 %v1775_v26 }
 0x955   : > { %v1797_v37 = vor.u32 1.1754944e-38, %v1796_v33  ;;  %vm1795_vm8 = vcmp.eq.f32.partialorder %v1794_v35, 8.507059e+37 }
 0x959   : > { %v2668_v27 = vpop.eup %2667 }
 0x95a   : > { %v1786_v28 = vmul.f32 %v2668_v27, %v1775_v26  ;;  %v2621_v30 = vpop.permute.xlu2 %2620  ;;  %vm1791_vm5 = vweird.f32 %v2668_v27 }
 0x95b   : > { %v2622_v31 = vunpack.i.l.bf16 %v2621_v30  ;;  %v2623_v13 = vunpack.i.h.bf16 %v2621_v30  ;;  %vm1792_vm7 = vmor %vm1790_vm6, %vm1791_vm5 }
 0x95c   : > { %v1787_v32 = vsub.f32 1.0, %v1786_v28 }
 0x95d   : > { %1883 = vmatpush.msrb.mxu0 %v2622_v31 }
 0x95e   : > { %v1788_v34 = vmul.f32 %v2668_v27, %v1787_v32 }
 0x95f   : > { %1884 = vmatpush.msrb.mxu0 %v2623_v13 }
 0x960   : > { %v1789_v36 = vadd.f32 %v2668_v27, %v1788_v34 }
 0x962   : > { %v1793_v38 = vsel %vm1792_vm7, %v2668_v27, %v1789_v36  ;;  %v3597_v39 = vpop.xlane.xlu0 %1544 }
 0x963   : > { %v1798_v40 = vsel %vm1795_vm8, %v1797_v37, %v1793_v38  ;;  %v1566_v34 = vand.u32 2147483648, %v3597_v39  ;;  %vm1560_vm7 = vweird.f32 %v3597_v39  ;;  %v1564_v36 = vand.u32 2147483647, %v3597_v39 }
 0x964   : > { %v1799_v41 = vmul.f32 %v3564_v54, %v1798_v40 }
 0x966   : > { %2482 = vmatmul.msk.f32.vlgmr.msrb.gmra.mxu0 %vm1050_vm1, %v1799_v41 }
 0x96a   : > { %v1778_v43 = vpop.xlane.xlu0 %1777 }
 0x96b   : > { %2669 = vrcp.f32 %v1778_v43  ;;  %v1811_v50 = vand.u32 2147483648, %v1778_v43  ;;  %v1809_v53 = vand.u32 2147483647, %v1778_v43  ;;  %vm1805_vm10 = vweird.f32 %v1778_v43  ;;  %v3609_v2 = vpop.xlane.xlu1 %1547 }
 0x96c   : > { %2671 = vpow2.f32 %v1541_v45 }
 0x96d   : > { %v1812_v54 = vor.u32 1.1754944e-38, %v1811_v50  ;;  %vm1810_vm12 = vcmp.eq.f32.partialorder %v1809_v53, 8.507059e+37  ;;  %2673 = vrcp.f32 %v3597_v39 }
 0x971   : > { %v2670_v47 = vpop.eup %2669 }
 0x972   : > { %v1801_v48 = vmul.f32 %v2670_v47, %v1778_v43  ;;  %vm1806_vm9 = vweird.f32 %v2670_v47  ;;  %v3602_v55 = vpop.eup %2671  ;;  %v1567_v43 = vor.u32 1.1754944e-38, %v1566_v34  ;;  %v2637_v34 = vld [vmem:[%s828_s29] ss:$0 sm:$0xff]  ;;  %s3061_s29 = smov 16  }
 0x973   : > { %vm1807_vm11 = vmor %vm1805_vm10, %vm1806_vm9  ;;  %v1552_v46 = vsel %vm1050_vm1, %v3602_v55, 0.0  ;;  %v2674_v4 = vpop.eup %2673 }
 0x974   : > { %v1802_v49 = vsub.f32 1.0, %v1801_v48  ;;  %vm1561_vm5 = vweird.f32 %v2674_v4 }
 0x975   : > { %vm1562_vm9 = vmor %vm1560_vm7, %vm1561_vm5 }
 0x976   : > { %v1803_v51 = vmul.f32 %v2670_v47, %v1802_v49 }
 0x978   : > { %v1804_v56 = vadd.f32 %v2670_v47, %v1803_v51  ;;  %v1581_v51 = vand.u32 2147483648, %v3609_v2 }
 0x97a   : > { %v1808_v59 = vsel %vm1807_vm11, %v2670_v47, %v1804_v56  ;;  %vm1565_vm11 = vcmp.eq.f32.partialorder %v1564_v36, 8.507059e+37 }
 0x97b   : > { %1553 = vadd.xlane.f32.xlu0 %v1552_v46  ;;  %v1813_v60 = vsel %vm1810_vm12, %v1812_v54, %v1808_v59  ;;  %v1582_v59 = vor.u32 1.1754944e-38, %v1581_v51  ;;  %v1998_v51 = vld [vmem:[%s990_s25 + $0x8] sm:$0xff] }
 0x97c   : > { %v1814_v62 = vmul.f32 %v3572_v3, %v1813_v60  ;;  %v1556_v3 = vmul.f32 %v2674_v4, %v3597_v39 }
 0x97d   : > { %v2626_v63 = vpop.permute.xlu0 %2625 }
 0x97e   : > { %v2627_v57 = vunpack.i.l.bf16 %v2626_v63  ;;  %2483 = vmatmul.msk.f32.gmra.mxu0 %vm1050_vm1, %v1814_v62  ;;  %v2628_v58 = vunpack.i.h.bf16 %v2626_v63  ;;  %v1557_v52 = vsub.f32 1.0, %v1556_v3 }
 0x980   : > { %1651 = vmatpush.msra.mxu1 %v2627_v57  ;;  %v1558_v22 = vmul.f32 %v2674_v4, %v1557_v52 }
 0x982   : > { %1652 = vmatpush.msra.mxu1 %v2628_v58  ;;  %v1559_v32 = vadd.f32 %v2674_v4, %v1558_v22 }
 0x984   : > { %v1563_v38 = vsel %vm1562_vm9, %v2674_v4, %v1559_v32 }
 0x985   : > { %v1568_v48 = vsel %vm1565_vm11, %v1567_v43, %v1563_v38  ;;  %vm1914_vm11 = vcmask 130112  }
 0x986   : > { %v1569_v56 = vmul.f32 %v3568_v0, %v1568_v48  ;;  %v2000_v48 = vld [vmem:[%s990_s25 + $0x18] sm:$0xff] }
 0x987   : > { %2020 = vmatpush.msra.mxu0 %v2000_v48 }
 0x993   : > { %v3613_v14 = vpop.xlane.xlu2 %1550 }
 0x994   : > { %v1596_v63 = vand.u32 2147483648, %v3613_v14  ;;  %v1594_v57 = vand.u32 2147483647, %v3613_v14 }
 0x9a8   : > { %v1781_v1 = vpop.xlane.xlu0 %1780 }
 0x9a9   : > { %2675 = vrcp.f32 %v1781_v1  ;;  %v1826_v10 = vand.u32 2147483648, %v1781_v1  ;;  %v1824_v12 = vand.u32 2147483647, %v1781_v1  ;;  %vm1820_vm14 = vweird.f32 %v1781_v1 }
 0x9aa   : > { %2677 = vrcp.f32 %v3609_v2 }
 0x9ab   : > { %v1827_v18 = vor.u32 1.1754944e-38, %v1826_v10  ;;  %vm1825_vm2 = vcmp.eq.f32.partialorder %v1824_v12, 8.507059e+37 }
 0x9af   : > { %v2676_v6 = vpop.eup %2675 }
 0x9b0   : > { %v1816_v7 = vmul.f32 %v2676_v6, %v1781_v1  ;;  %v1784_v8 = vpop.xlane.xlu0 %1783  ;;  %vm1821_vm13 = vweird.f32 %v2676_v6  ;;  %v3615_v15 = vpop.eup %2677  ;;  %v1597_v1 = vor.u32 1.1754944e-38, %v1596_v63 }
 0x9b1   : > { %2679 = vrcp.f32 %v1784_v8  ;;  %vm1822_vm15 = vmor %vm1820_vm14, %vm1821_vm13  ;;  %v1571_v24 = vmul.f32 %v3615_v15, %v3609_v2  ;;  %v1841_v28 = vand.u32 2147483648, %v1784_v8  ;;  %v1839_v31 = vand.u32 2147483647, %v1784_v8 }
 0x9b2   : > { %v1817_v9 = vsub.f32 1.0, %v1816_v7  ;;  %2681 = vrcp.f32 %v3613_v14  ;;  %vm1835_vm6 = vweird.f32 %v1784_v8  ;;  %vm1576_vm12 = vweird.f32 %v3615_v15 }
 0x9b3   : > { %v1572_v33 = vsub.f32 1.0, %v1571_v24  ;;  %v1842_v37 = vor.u32 1.1754944e-38, %v1841_v28  ;;  %vm1840_vm10 = vcmp.eq.f32.partialorder %v1839_v31, 8.507059e+37  ;;  %vm1575_vm13 = vweird.f32 %v3609_v2 }
 0x9b4   : > { %v1818_v11 = vmul.f32 %v2676_v6, %v1817_v9  ;;  %vm1577_vm14 = vmor %vm1575_vm13, %vm1576_vm12  ;;  %vm1994_vm12 = vcmask 261312  }
 0x9b5   : > { %v1573_v40 = vmul.f32 %v3615_v15, %v1572_v33 }
 0x9b6   : > { %v1819_v16 = vadd.f32 %v2676_v6, %v1818_v11 }
 0x9b7   : > { %v2680_v17 = vpop.eup %2679  ;;  %v1574_v50 = vadd.f32 %v3615_v15, %v1573_v40 }
 0x9b8   : > { %v1831_v19 = vmul.f32 %v2680_v17, %v1784_v8  ;;  %v1823_v20 = vsel %vm1822_vm15, %v2676_v6, %v1819_v16  ;;  %vm1836_vm4 = vweird.f32 %v2680_v17  ;;  %v2682_v13 = vpop.eup %2681 }
 0x9b9   : > { %v1828_v25 = vsel %vm1825_vm2, %v1827_v18, %v1823_v20  ;;  %vm1837_vm8 = vmor %vm1835_vm6, %vm1836_vm4  ;;  %v1586_v41 = vmul.f32 %v2682_v13, %v3613_v14  ;;  %v1578_v46 = vsel %vm1577_vm14, %v3615_v15, %v1574_v50  ;;  %vm1591_vm2 = vweird.f32 %v2682_v13  ;;  %v1924_v18 = vld [vmem:[%s985_s27 + $0x8] sm:$0xff]  ;;  %v1999_v50 = vld [vmem:[%s990_s25 + $0x10] sm:$0xff] }
 0x9ba   : > { %v1832_v26 = vsub.f32 1.0, %v1831_v19  ;;  %v1829_v27 = vmul.f32 %v3588_v21, %v1828_v25  ;;  %vm1590_vm4 = vweird.f32 %v3613_v14  ;;  %vm1595_vm6 = vcmp.eq.f32.partialorder %v1594_v57, 8.507059e+37  ;;  %v1923_v19 = vld [vmem:[%s985_s27] sm:$0xff]  ;;  %2021 = vmatpush.msra.mxu0 %v1999_v50 }
 0x9bb   : > { %v1587_v39 = vsub.f32 1.0, %v1586_v41  ;;  %vm1592_vm5 = vmor %vm1590_vm4, %vm1591_vm2 }
 0x9bc   : > { %v1833_v30 = vmul.f32 %v2680_v17, %v1832_v26  ;;  %2484 = vmatmul.msk.f32.gmra.mxu0 %vm1050_vm1, %v1829_v27 }
 0x9bd   : > { %v1588_v54 = vmul.f32 %v2682_v13, %v1587_v39  ;;  %2022 = vmatpush.msra.mxu0 %v1998_v51 }
 0x9be   : > { %v1834_v35 = vadd.f32 %v2680_v17, %v1833_v30 }
 0x9bf   : > { %v1589_v62 = vadd.f32 %v2682_v13, %v1588_v54 }
 0x9c0   : > { %v1838_v21 = vsel %vm1837_vm8, %v2680_v17, %v1834_v35 }
 0x9c1   : > { %v1843_v42 = vsel %vm1840_vm10, %v1842_v37, %v1838_v21  ;;  %v1593_v58 = vsel %vm1592_vm5, %v2682_v13, %v1589_v62 }
 0x9c2   : > { %v1844_v45 = vmul.f32 %v3592_v23, %v1843_v42  ;;  %v1579_v23 = vand.u32 2147483647, %v3609_v2  ;;  %v1598_v2 = vsel %vm1595_vm6, %v1597_v1, %v1593_v58 }
 0x9c3   : > { %v2631_v47 = vpop.permute.xlu0 %2630  ;;  %v1599_v4 = vmul.f32 %v3583_v61, %v1598_v2 }
 0x9c4   : > { %v2632_v49 = vunpack.i.l.bf16 %v2631_v47  ;;  %2485 = vmatmul.msk.f32.gmra.mxu0 %vm1050_vm1, %v1844_v45  ;;  %v2633_v53 = vunpack.i.h.bf16 %v2631_v47  ;;  %vm1580_vm15 = vcmp.eq.f32.partialorder %v1579_v23, 8.507059e+37 }
 0x9c5   : > { %v1583_v60 = vsel %vm1580_vm15, %v1582_v59, %v1578_v46  ;;  %v2638_v46 = vld [vmem:[%s837_s0] ss:$0 sm:$0xff] }
 0x9c6   : > { %1653 = vmatpush.msra.mxu1 %v2632_v49  ;;  %v1584_v0 = vmul.f32 %v3576_v5, %v1583_v60 }
 0x9c8   : > { %1654 = vmatpush.msra.mxu1 %v2633_v53  ;;  %v1997_v53 = vld [vmem:[%s990_s25] sm:$0xff] }
 0x9c9   : > { %2470 = vmatmul.msk.f32.vlgmr.msra.gmra.mxu1 %vm1050_vm1, %v1569_v56  ;;  %2023 = vmatpush.msra.mxu0 %v1997_v53 }
 0x9ca   : > { %1955 = vmatpush.msrb.mxu1 %v1924_v18 }
 0x9cc   : > { %1956 = vmatpush.msrb.mxu1 %v1923_v19 }
 0x9d1   : > { %2471 = vmatmul.msk.f32.gmra.mxu1 %vm1050_vm1, %v1584_v0  ;;  %v2053_v0 = vld [vmem:[%s995_s26 + $0x18] sm:$0xff] }
 0x9d2   : > { %2073 = vmatpush.msra.mxu3 %v2053_v0 }
 0x9d9   : > { %2472 = vmatmul.msk.f32.gmra.mxu1 %vm1050_vm1, %v1599_v4 }
 0x9e3   : > { %v1886_v6 = vpop.f32.mrf.mxu0 }
 0x9e4   : > { %1902 = vrot.lane.b32.xlu1 %v1886_v6, %s3060_s13  ;;  %v2052_v6 = vld [vmem:[%s995_s26 + $0x10] sm:$0xff] }
 0x9e5   : > { %2074 = vmatpush.msra.mxu3 %v2052_v6 }
 0x9ee   : > { %v1554_v7 = vpop.xlane.xlu0 %1553 }
 0x9ef   : > { %2683 = vrcp.f32 %v1554_v7  ;;  %v1611_v9 = vand.u32 2147483648, %v1554_v7  ;;  %v1609_v11 = vand.u32 2147483647, %v1554_v7  ;;  %vm1605_vm8 = vweird.f32 %v1554_v7 }
 0x9f1   : > { %v1612_v52 = vor.u32 1.1754944e-38, %v1611_v9  ;;  %vm1610_vm10 = vcmp.eq.f32.partialorder %v1609_v11, 8.507059e+37 }
 0x9f5   : > { %v2684_v5 = vpop.eup %2683 }
 0x9f6   : > { %v1601_v8 = vmul.f32 %v2684_v5, %v1554_v7  ;;  %vm1606_vm7 = vweird.f32 %v2684_v5  ;;  %v2050_v7 = vld [vmem:[%s995_s26] sm:$0xff] }
 0x9f7   : > { %vm1607_vm9 = vmor %vm1605_vm8, %vm1606_vm7 }
 0x9f8   : > { %v1602_v3 = vsub.f32 1.0, %v1601_v8 }
 0x9fa   : > { %v1603_v10 = vmul.f32 %v2684_v5, %v1602_v3 }
 0x9fb   : > { %v1889_v12 = vpop.f32.mrf.mxu0 }
 0x9fc   : > { %1904 = vrot.lane.b32.xlu2 %v1889_v12, %s3060_s13  ;;  %v1604_v61 = vadd.f32 %v2684_v5, %v1603_v10 }
 0x9fe   : > { %v1608_v14 = vsel %vm1607_vm9, %v2684_v5, %v1604_v61 }
 0x9ff   : > { %v1613_v15 = vsel %vm1610_vm10, %v1612_v52, %v1608_v14 }
 0xa00   : > { %v1614_v16 = vmul.f32 %v3602_v55, %v1613_v15 }
 0xa02   : > { %2473 = vmatmul.msk.f32.gmra.mxu1 %vm1050_vm1, %v1614_v16  ;;  %v2639_v16 = vld [vmem:[%s846_s11] ss:$0 sm:$0xff]  ;;  %s2447_s11 = sshll.u32 %s3797_s1, 3 }
 0xa39   : > { %v1892_v17 = vpop.f32.mrf.mxu0 }
 0xa3a   : > { %1906 = vrot.lane.b32.xlu1 %v1892_v17, %s3060_s13 }
 0xa41   : > { %v1895_v20 = vpop.f32.mrf.mxu0 }
 0xa42   : > { %1908 = vrot.lane.b32.xlu2 %v1895_v20, %s3060_s13 }
 0xa46   : > { %v1656_v22 = vpop.f32.mrf.mxu1 }
 0xa47   : > { %1668 = vst.msk [vmem:[#allocation6] sm:$0xff] %vm1129_vm3, %v1656_v22  ;;  %v2640_v22 = vld [vmem:[%s855_s23] ss:$0 sm:$0xff] }
 0xa4e   : > { %v1659_v55 = vpop.f32.mrf.mxu1 }
 0xa4f   : > { %1669 = vst.msk [vmem:[#allocation6 + $0x8] sm:$0xff] %vm1129_vm3, %v1659_v55 }
 0xa56   : > { %v1662_v24 = vpop.f32.mrf.mxu1  ;;  %v1903_v25 = vpop.permute.xlu1 %1902 }
 0xa57   : > { %1670 = vst.msk [vmem:[#allocation6 + $0x10] sm:$0xff] %vm1129_vm3, %v1662_v24  ;;  %v1905_v26 = vpop.permute.xlu2 %1904 }
 0xa58   : > { %1915 = vst.msk [vmem:[#allocation6] sm:$0xff] %vm1914_vm11, %v1903_v25 }
 0xa59   : > { %1916 = vst.msk [vmem:[#allocation6 + $0x8] sm:$0xff] %vm1914_vm11, %v1905_v26 }
 0xa5f   : > { %v1919_v27 = vld [vmem:[#allocation6] sm:$0xff] }
 0xa60   : > { %2486 = vmatmul.msk.f32.vlgmr.msrb.gmra.mxu1 %vm1012_vm0, %v1919_v27  ;;  %v1920_v28 = vld [vmem:[#allocation6 + $0x8] sm:$0xff] }
 0xa68   : > { %2487 = vmatmul.msk.f32.gmra.mxu1 %vm1012_vm0, %v1920_v28 }
 0xa7f   : > { %v1665_v30 = vpop.f32.mrf.mxu1 }
 0xa80   : > { %1671 = vst.msk [vmem:[#allocation6 + $0x18] sm:$0xff] %vm1129_vm3, %v1665_v30 }
 0xa9c   : > { %v1909_v31 = vpop.permute.xlu2 %1908 }
 0xa9d   : > { %1918 = vst.msk [vmem:[#allocation6 + $0x18] sm:$0xff] %vm1914_vm11, %v1909_v31 }
 0xaa4   : > { %v1922_v13 = vld [vmem:[#allocation6 + $0x18] sm:$0xff] }
 0xaac   : > { %v1907_v32 = vpop.permute.xlu1 %1906 }
 0xaad   : > { %1917 = vst.msk [vmem:[#allocation6 + $0x10] sm:$0xff] %vm1914_vm11, %v1907_v32 }
 0xab4   : > { %v1921_v33 = vld [vmem:[#allocation6 + $0x10] sm:$0xff] }
 0xab5   : > { %2488 = vmatmul.msk.f32.gmra.mxu1 %vm1012_vm0, %v1921_v33 }
 0xabd   : > { %2489 = vmatmul.msk.f32.gmra.mxu1 %vm1012_vm0, %v1922_v13 }
 0xadd   : > { %v1958_v35 = vpop.f32.mrf.mxu1 }
 0xade   : > { %v1959_v36 = vadd.f32 %v2637_v34, %v1958_v35 }
 0xae0   : > { %1970 = vst.msk [vmem:[#allocation7] sm:$0xff] %vm1129_vm3, %v1959_v36 }
 0xae5   : > { %v1961_v37 = vpop.f32.mrf.mxu1 }
 0xae6   : > { %v1962_v21 = vadd.f32 %v2637_v34, %v1961_v37 }
 0xae7   : > { %v1974_v38 = vld [vmem:[#allocation7] sm:$0xff] }
 0xae8   : > { %1971 = vst.msk [vmem:[#allocation7 + $0x8] sm:$0xff] %vm1129_vm3, %v1962_v21 }
 0xae9   : > { %1975 = vst.msk [vmem:[#allocation8] sm:$0xff] %vm1129_vm3, %v1974_v38 }
 0xaef   : > { %v1976_v40 = vld [vmem:[#allocation7 + $0x8] sm:$0xff] }
 0xaf0   : > { %1978 = vrot.lane.b32.xlu0 %v1976_v40, %s3060_s13  ;;  %s3789_s13 = sld [smem:[#allocation46_spill]] }
 0xaf6   : > { %s1000_s17 = scalar_lea.vmem %s3789_s13, %s2497_s15  ;;  %s3790_s15 = sld [smem:[#allocation47_spill]] }
 0xaf7   : > { %v2085_v5 = vld [vmem:[%s1000_s17 + $0x8] sm:$0xff]  ;;  %v2084_v8 = vld [vmem:[%s1000_s17] sm:$0xff] }
 0xaf8   : > { %2107 = vmatpush.msrb.mxu2 %v2085_v5 }
 0xafa   : > { %2108 = vmatpush.msrb.mxu2 %v2084_v8 }
 0xafc   : > { %s1004_s2 = scalar_lea.vmem %s3790_s15, %s2447_s11 }
 0xb32   : > { %v1964_v41 = vpop.f32.mrf.mxu1 }
 0xb33   : > { %v1965_v42 = vadd.f32 %v2637_v34, %v1964_v41 }
 0xb35   : > { %1972 = vst.msk [vmem:[#allocation7 + $0x10] sm:$0xff] %vm1129_vm3, %v1965_v42 }
 0xb3a   : > { %v1967_v43 = vpop.f32.mrf.mxu1 }
 0xb3b   : > { %v1968_v45 = vadd.f32 %v2637_v34, %v1967_v43 }
 0xb3c   : > { %v1982_v47 = vld [vmem:[#allocation7 + $0x10] sm:$0xff] }
 0xb3d   : > { %1973 = vst.msk [vmem:[#allocation7 + $0x18] sm:$0xff] %vm1129_vm3, %v1968_v45  ;;  %1984 = vrot.lane.b32.xlu1 %v1982_v47, %s3061_s29  ;;  %vm1987_vm3 = vcmask 195712  }
 0xb44   : > { %v1989_v49 = vld [vmem:[#allocation7 + $0x18] sm:$0xff] }
 0xb45   : > { %1991 = vrot.lane.b32.xlu2 %v1989_v49, %s3062_s21 }
 0xb62   : > { %v1979_v39 = vpop.permute.xlu0 %1978 }
 0xb63   : > { %1981 = vst.msk [vmem:[#allocation8] sm:$0xff] %vm1914_vm11, %v1979_v39 }
 0xb9f   : > { %v1992_v23 = vpop.permute.xlu2 %1991 }
 0xbaf   : > { %v1985_v56 = vpop.permute.xlu1 %1984 }
 0xbb0   : > { %1988 = vst.msk [vmem:[#allocation8] sm:$0xff] %vm1987_vm3, %v1985_v56 }
 0xbb1   : > { %1995 = vst.msk [vmem:[#allocation8] sm:$0xff] %vm1994_vm12, %v1992_v23 }
 0xbb8   : > { %v1996_v54 = vld [vmem:[#allocation8] sm:$0xff] }
 0xbb9   : > { %2490 = vmatmul.msk.f32.vlgmr.msra.gmra.mxu0 %vm1050_vm1, %v1996_v54 }
 0xc36   : > { %v2025_v59 = vpop.f32.mrf.mxu0 }
 0xc37   : > { %v2026_v60 = vadd.f32 %v2638_v46, %v2025_v59 }
 0xc39   : > { %v2028_v62 = vadd.f32 %v2026_v60, %v3479_v44  ;;  %v2051_v44 = vld [vmem:[%s995_s26 + $0x8] sm:$0xff] }
 0xc3a   : > { %2075 = vmatpush.msra.mxu3 %v2051_v44 }
 0xc3b   : > { %v2029_v63 = vsel %vm1050_vm1, %v2028_v62, 0.0 }
 0xc3c   : > { %2030 = vadd.xlane.f32.xlu1 %v2029_v63  ;;  %2076 = vmatpush.msra.mxu3 %v2050_v7 }
 0xcaf   : > { %v2031_v57 = vpop.xlane.xlu1 %2030 }
 0xcb0   : > { %v2032_v58 = vmul.f32 %v2031_v57, %v3474_v29 }
 0xcb2   : > { %v2033_v1 = vsub.f32 %v2028_v62, %v2032_v58 }
 0xcb4   : > { %v2034_v2 = vmul.f32 %v2033_v1, %v2033_v1 }
 0xcb6   : > { %v2035_v4 = vsel %vm1050_vm1, %v2034_v2, 0.0 }
 0xcb7   : > { %2036 = vadd.xlane.f32.xlu2 %v2035_v4 }
 0xd2a   : > { %v2037_v29 = vpop.xlane.xlu2 %2036 }
 0xd2b   : > { %v2038_v3 = vmul.f32 0.032258064, %v2037_v29 }
 0xd2d   : > { %2685 = vrsqrt.f32 %v2038_v3  ;;  %vm2045_vm14 = vweird.f32 %v2038_v3 }
 0xd33   : > { %v2686_v9 = vpop.eup %2685 }
 0xd34   : > { %v2040_v10 = vmul.f32 %v2686_v9, %v2038_v3  ;;  %vm2046_vm13 = vweird.f32 %v2686_v9 }
 0xd35   : > { %vm2047_vm15 = vmor %vm2045_vm14, %vm2046_vm13 }
 0xd36   : > { %v2041_v11 = vmul.f32 %v2686_v9, %v2040_v10 }
 0xd38   : > { %v2042_v12 = vmul.f32 0.5, %v2041_v11 }
 0xd3a   : > { %v2043_v61 = vsub.f32 1.5, %v2042_v12 }
 0xd3c   : > { %v2044_v52 = vmul.f32 %v2686_v9, %v2043_v61 }
 0xd3e   : > { %v2048_v14 = vsel %vm2047_vm15, %v2686_v9, %v2044_v52 }
 0xd3f   : > { %v2049_v15 = vmul.f32 %v2048_v14, %v2033_v1 }
 0xd41   : > { %2491 = vmatmul.msk.f32.vlgmr.msra.gmra.mxu3 %vm1050_vm1, %v2049_v15 }
 0xdc4   : > { %v2078_v17 = vpop.f32.mrf.mxu3 }
 0xdc5   : > { %v2079_v18 = vadd.f32 %v2639_v16, %v2078_v17 }
 0xdc7   : > { %vm2081_vm2 = vcmp.gt.f32.partialorder %v2079_v18, 0.0  ;;  %v2082_v19 = vmul.f32 0.01, %v2079_v18 }
 0xdc9   : > { %v2083_v20 = vsel %vm2081_vm2, %v2079_v18, %v2082_v19 }
 0xdca   : > { %2492 = vmatmul.msk.f32.vlgmr.msrb.gmra.mxu2 %vm1012_vm0, %v2083_v20 }
 0xe4d   : > { %v2110_v55 = vpop.f32.mrf.mxu2 }
 0xe4e   : > { %v2111_v24 = vadd.f32 %v2640_v22, %v2110_v55 }
 0xe50   : > { %v2113_v25 = vsub.f32 0.0, %v2111_v24 }
 0xe52   : > { %v2114_v26 = vmul.f32 1.442695, %v2113_v25 }
 0xe54   : > { %2687 = vpow2.f32 %v2114_v26 }
 0xe5a   : > { %v2688_v27 = vpop.eup %2687 }
 0xe5b   : > { %v2116_v28 = vadd.f32 1.0, %v2688_v27 }
 0xe5d   : > { %2689 = vrcp.f32 %v2116_v28  ;;  %v2128_v33 = vand.u32 2147483648, %v2116_v28  ;;  %v2126_v34 = vand.u32 2147483647, %v2116_v28  ;;  %vm2122_vm4 = vweird.f32 %v2116_v28 }
 0xe5f   : > { %v2129_v36 = vor.u32 1.1754944e-38, %v2128_v33  ;;  %vm2127_vm6 = vcmp.eq.f32.partialorder %v2126_v34, 8.507059e+37 }
 0xe63   : > { %v2690_v30 = vpop.eup %2689 }
 0xe64   : > { %v2118_v31 = vmul.f32 %v2690_v30, %v2116_v28  ;;  %vm2123_vm1 = vweird.f32 %v2690_v30 }
 0xe65   : > { %vm2124_vm5 = vmor %vm2122_vm4, %vm2123_vm1 }
 0xe66   : > { %v2119_v32 = vsub.f32 1.0, %v2118_v31 }
 0xe68   : > { %v2120_v13 = vmul.f32 %v2690_v30, %v2119_v32 }
 0xe6a   : > { %v2121_v35 = vadd.f32 %v2690_v30, %v2120_v13 }
 0xe6c   : > { %v2125_v37 = vsel %vm2124_vm5, %v2690_v30, %v2121_v35 }
 0xe6d   : > { %v2130_v21 = vsel %vm2127_vm6, %v2129_v36, %v2125_v37 }
 0xe6e   : > { %2132 = vst.msk [vmem:[%s1004_s2] sm:$0xff] %vm1012_vm0, %v2130_v21 }
 0xe6f PF: > { %s3791_s21 = sld [smem:[#allocation32_spill]]  ;;  %s3794_s0 = smov %s3037_s30 }
 0xe70   : > { %s3792_s1 = sld [smem:[#allocation31_spill]] }
 0xe71   : > { %s3793_s20 = sld [smem:[#allocation33_spill]] }
 0xe75   : > { %p40_p8 = scmp.ge.s32.totalorder %s3791_s21, 4  }
 0xe76   : > { %s3795_s30 = smov %s3792_s1 }
 0xe77   :  { %42 = sbr.rel (!%p40_p8) target bundleno = 26 (0x1a), region = 242 }
 0xe7c   :  { %2152 = vsyncpa [#allocation10], 1 }
 0xe7d   :  { %2154 = vsyncpa [#allocation10 + $0x1], 1 }
 0xe7e   :  { %2155 = vsyncpa [#allocation12], 1 }
 0xe7f   :  { %2156 = vsyncpa [#allocation15], 1 }
 0xe80   :  { %2158 = vsyncpa [#allocation15 + $0x1], 1 }
 0xe81   :  { %2159 = vsyncpa [#allocation18], 1 }
 0xe82   :  { %2161 = vsyncpa [#allocation18 + $0x1], 1 }
 0xe83   :  { %2162 = vsyncpa [#allocation21], 1 }
 0xe84   :  { %2164 = vsyncpa [#allocation21 + $0x1], 1 }
 0xe85   :  { %2165 = vsyncpa [#allocation24], 1 }
 0xe86   :  { %2167 = vsyncpa [#allocation24 + $0x1], 1 }

</bundles_post_ra>
